<compile_context>
chip_gen: v6e
topology: v6e:2x2x1
jax: 0.10.0
libtpu: 0.0.40
codegen_flags: <defaults>
</compile_context>

<pallas_src>
import functools

import numpy as np
import jax
import jax.numpy as jnp
from jax.experimental import pallas as pl
from jax.experimental.pallas import tpu as pltpu


# ---------------------------------------------------------------------------
# Kernel A: fused cross-attention MSE + mask weight-map accumulation.
# Grid: one step per mid prompt token (tokens 1 .. prompt_n-2).
# Outputs (both revisited every step -> VMEM-resident accumulators):
#   cross_ref : (1, 1)  lambda-weighted cross-attention loss
#   w_ref     : (H, W)  sum over tokens of lambda_self_* * (mask > 0)
# ---------------------------------------------------------------------------
def _fused_mask_cross_kernel(is_tok_ref,            # SMEM prefetch (n_tok,) i32
                             attn_tok_ref,          # (1, H, W)
                             attn_erase_tok_ref,    # (1, H, W)
                             wr_up_ref,             # (256, H)
                             wc_upT_ref,            # (W, 256)
                             wr_dn_ref,             # (H, 256)
                             wc_dnT_ref,            # (256, W)
                             cross_ref,             # out (1, 1)
                             w_ref,                 # out (H, W)
                             *, threshold, lam_retain, lam_erase,
                             lam_self_retain, lam_self_erase, inv_hw):
    i = pl.program_id(0)

    @pl.when(i == 0)
    def _():
        cross_ref[...] = jnp.zeros_like(cross_ref)
        w_ref[...] = jnp.zeros_like(w_ref)

    is_erase = is_tok_ref[i] == 1          # token (i+1) in token_indices?
    a = attn_tok_ref[0]                    # (H, W)
    ae = attn_erase_tok_ref[0]             # (H, W)

    # ---- cross-attention MSE for this token (retain or erase term) -------
    d = a - ae
    sse = jnp.sum(d * d)
    lam_x = jnp.where(is_erase, jnp.float32(lam_erase), jnp.float32(lam_retain))
    cross_ref[...] += lam_x * sse * jnp.float32(inv_hw)

    # ---- mask -------------------------------------------------------------
    # (The PyTorch `255*a/a.max()` normalization is dropped: the relative
    #  threshold below is invariant under positive scaling of `a`.)
    up = jnp.dot(wr_up_ref[...], a, preferred_element_type=jnp.float32)
    up = jnp.dot(up, wc_upT_ref[...], preferred_element_type=jnp.float32)  # (256,256)
    thr = jnp.where(is_erase, jnp.float32(threshold), jnp.float32(threshold + 0.1))
    # PyTorch's two in-place assignments reduce to this single threshold.
    m = (up >= jnp.max(up) * thr).astype(jnp.float32)      # {0, 1}
    dn = jnp.dot(wr_dn_ref[...], m, preferred_element_type=jnp.float32)
    dn = jnp.dot(dn, wc_dnT_ref[...], preferred_element_type=jnp.float32)  # (H, W)
    pos = (dn > 0.0).astype(jnp.float32)
    lam_s = jnp.where(is_erase, jnp.float32(lam_self_erase),
                      jnp.float32(lam_self_retain))
    w_ref[...] += lam_s * pos


def fused_cross_and_masks(attn_tok, attn_erase_tok, is_tok,
                          wr_up, wc_upT, wr_dn, wc_dnT, *,
                          threshold, lam_retain, lam_erase,
                          lam_self_retain, lam_self_erase):
    n_tok, h, w = attn_tok.shape
    kernel = functools.partial(
        _fused_mask_cross_kernel,
        threshold=float(threshold),
        lam_retain=float(lam_retain), lam_erase=float(lam_erase),
        lam_self_retain=float(lam_self_retain),
        lam_self_erase=float(lam_self_erase),
        inv_hw=1.0 / float(h * w))
    return pl.pallas_call(
        kernel,
        out_shape=(jax.ShapeDtypeStruct((1, 1), jnp.float32),
                   jax.ShapeDtypeStruct((h, w), jnp.float32)),
        grid_spec=pltpu.PrefetchScalarGridSpec(
            num_scalar_prefetch=1,
            grid=(n_tok,),
            in_specs=[
                pl.BlockSpec((1, h, w), lambda i, tok: (i, 0, 0)),
                pl.BlockSpec((1, h, w), lambda i, tok: (i, 0, 0)),
                # Constant bilinear weight matrices (loaded once; double
                # buffering them wastes a little VMEM but pl.Buffered(1) is
                # not guaranteed stable, so we keep defaults).
                pl.BlockSpec((256, h), lambda i, tok: (0, 0)),
                pl.BlockSpec((w, 256), lambda i, tok: (0, 0)),
                pl.BlockSpec((h, 256), lambda i, tok: (0, 0)),
                pl.BlockSpec((256, w), lambda i, tok: (0, 0)),
            ],
            out_specs=(pl.BlockSpec((1, 1), lambda i, tok: (0, 0)),
                       pl.BlockSpec((h, w), lambda i, tok: (0, 0))),
        ),
        # Token axis carries accumulators -> must be "arbitrary".
        compiler_params=pltpu.CompilerParams(
            dimension_semantics=("arbitrary",)),
    )(is_tok, attn_tok, attn_erase_tok, wr_up, wc_upT, wr_dn, wc_dnT)


# ---------------------------------------------------------------------------
# Kernel B: weighted self-attention MSE.
#   x, y : (Npix, Npos)   w : (1, Npos)
#   out  : (1, 1) = sum_j ( sum_i (x[i,j]-y[i,j])^2 / Npix ) * w[j]
# Tiled over (position tiles, pixel tiles) with the pixel (reduction) axis
# last; the scalar output is accumulated across the whole grid.
# ---------------------------------------------------------------------------
def _weighted_self_sse_kernel(x_ref, y_ref, w_ref, o_ref, *, inv_npix):
    first = (pl.program_id(0) == 0) & (pl.program_id(1) == 0)

    @pl.when(first)
    def _():
        o_ref[...] = jnp.zeros_like(o_ref)

    d = x_ref[...] - y_ref[...]
    col = jnp.sum(d * d, axis=0, keepdims=True)                 # (1, tj)
    o_ref[...] += jnp.sum(col * w_ref[...], axis=1,
                          keepdims=True) * jnp.float32(inv_npix)


def _pick_tile(n, cap, unit):
    """Largest multiple-of-`unit` divisor of n that is <= cap, else n (full)."""
    if n <= cap:
        return n
    t = (cap // unit) * unit
    while t >= unit:
        if n % t == 0:
            return t
        t -= unit
    return n


def weighted_self_sse(x, y, w_row, *, inv_npix):
    npix, npos = x.shape
    # Lane tile up to 512 (great on v5e/v6e); pixel axis tiled as a grid
    # reduction so per-step VMEM stays ~8 MiB even at 4096x4096 -> safe on
    # v7x's 64 MiB VMEM as well.
    ti = _pick_tile(npix, 1024, 8)
    tj = _pick_tile(npos, 512, 128)
    kernel = functools.partial(_weighted_self_sse_kernel, inv_npix=float(inv_npix))
    return pl.pallas_call(
        kernel,
        out_shape=jax.ShapeDtypeStruct((1, 1), jnp.float32),
        grid=(npos // tj, npix // ti),
        in_specs=[pl.BlockSpec((ti, tj), lambda j, i: (i, j)),
                  pl.BlockSpec((ti, tj), lambda j, i: (i, j)),
                  pl.BlockSpec((1, tj), lambda j, i: (0, j))],
        out_specs=pl.BlockSpec((1, 1), lambda j, i: (0, 0)),
        compiler_params=pltpu.CompilerParams(
            dimension_semantics=("arbitrary", "arbitrary")),
    )(x, y, w_row)


# ---------------------------------------------------------------------------
# Bilinear-resize weight matrices matching F.interpolate(bilinear,
# align_corners=False, antialias=False).  Deterministic "parameters".
# ---------------------------------------------------------------------------
def _bilinear_matrix(out_size, in_size):
    scale = in_size / out_size
    wm = np.zeros((out_size, in_size), dtype=np.float32)
    for o in range(out_size):
        src = (o + 0.5) * scale - 0.5
        src = max(src, 0.0)
        i0 = min(int(np.floor(src)), in_size - 1)
        i1 = min(i0 + 1, in_size - 1)
        l1 = src - i0
        wm[o, i0] += 1.0 - l1
        wm[o, i1] += l1
    return wm


# ---------------------------------------------------------------------------
# AttnLoss.forward  (attn_loss_type == 'mse')
# ---------------------------------------------------------------------------
def attn_loss_forward(attn, attn_erase, self_attn, self_attn_erase, *,
                      prompt_n, token_indices,
                      lambda_retain=1.0, lambda_erase=-1.0,
                      lambda_self_retain=1.0, lambda_self_erase=-1.0,
                      threshold=0.85):
    token_indices = tuple(int(t) for t in token_indices)
    h, w, s = attn.shape
    a0, a1, npos = self_attn.shape
    hw = h * w
    mid = list(range(1, prompt_n - 1))
    n_tok = len(mid)

    attn = attn.astype(jnp.float32)
    attn_erase = attn_erase.astype(jnp.float32)

    # NOTE: the reference indexes mask[i-1] for i in token_indices, so
    # token_indices must lie in [1, prompt_n-2]; we rely on that here.
    is_tok = jnp.asarray([1 if t in token_indices else 0 for t in mid], jnp.int32)

    # Token-sliced (n_tok, H, W) views (tiny at these sizes).
    # TODO(synk): at production resolutions fold this transpose into kernel A
    #             (DMA attn in its native (H, W, S) layout, slice in-kernel).
    attn_tok = jnp.transpose(attn[:, :, 1:prompt_n - 1], (2, 0, 1))
    attn_erase_tok = jnp.transpose(attn_erase[:, :, 1:prompt_n - 1], (2, 0, 1))

    wr_up = jnp.asarray(_bilinear_matrix(256, h))
    wc_upT = jnp.asarray(_bilinear_matrix(256, w).T)
    wr_dn = jnp.asarray(_bilinear_matrix(h, 256))
    wc_dnT = jnp.asarray(_bilinear_matrix(w, 256).T)

    cross, w_map = fused_cross_and_masks(
        attn_tok, attn_erase_tok, is_tok, wr_up, wc_upT, wr_dn, wc_dnT,
        threshold=threshold,
        lam_retain=lambda_retain, lam_erase=lambda_erase,
        lam_self_retain=lambda_self_retain, lam_self_erase=lambda_self_erase)

    loss = cross[0, 0]

    if lambda_self_retain or lambda_self_erase:
        x = self_attn.astype(jnp.float32).reshape(a0 * a1, npos)
        y = self_attn_erase.astype(jnp.float32).reshape(a0 * a1, npos)
        w_row = w_map.reshape(1, hw)           # free row-major reshape (bitcast)
        self_term = weighted_self_sse(x, y, w_row, inv_npix=1.0 / (a0 * a1))
        loss = loss + self_term[0, 0]

    return loss


if __name__ == "__main__":
    key = jax.random.PRNGKey(0)
    H, W, S = 16, 16, 8
    PROMPT_N = 8
    TOKEN_INDICES = (2, 5)

    k1, k2, k3, k4 = jax.random.split(key, 4)
    attn = jax.random.uniform(k1, (H, W, S), jnp.float32)
    attn_erase = jax.random.uniform(k2, (H, W, S), jnp.float32)
    self_attn = jax.random.uniform(k3, (H, W, H * W), jnp.float32)
    self_attn_erase = jax.random.uniform(k4, (H, W, H * W), jnp.float32)

    fwd = jax.jit(functools.partial(
        attn_loss_forward,
        prompt_n=PROMPT_N, token_indices=TOKEN_INDICES,
        lambda_retain=1.0, lambda_erase=-1.0,
        lambda_self_retain=1.0, lambda_self_erase=-1.0))

    loss = jax.block_until_ready(fwd(attn, attn_erase, self_attn, self_attn_erase))
    print("KERNEL_OK")
</pallas_src>

<mosaic_0001>
module attributes {stable_mosaic.version = 11 : i64} {
  func.func @_fused_mask_cross_kernel(%arg0: i32, %arg1: memref<6xi32, #tpu.memory_space<smem>>, %arg2: memref<1x16x16xf32, #tpu.memory_space<vmem>>, %arg3: memref<1x16x16xf32, #tpu.memory_space<vmem>>, %arg4: memref<256x16xf32, #tpu.memory_space<vmem>>, %arg5: memref<16x256xf32, #tpu.memory_space<vmem>>, %arg6: memref<16x256xf32, #tpu.memory_space<vmem>>, %arg7: memref<256x16xf32, #tpu.memory_space<vmem>>, %arg8: memref<1x1xf32, #tpu.memory_space<vmem>>, %arg9: memref<16x16xf32, #tpu.memory_space<vmem>>) attributes {dimension_semantics = [#tpu.dimension_semantics<arbitrary>], iteration_bounds = array<i64: 6>, scalar_prefetch = 1 : i64, scratch_operands = 0 : i64, tpu.core_type = #tpu.core_type<tc>, window_params = [{transform_indices = @transform_0, window_bounds = array<i64: 1, 16, 16>}, {transform_indices = @transform_1, window_bounds = array<i64: 1, 16, 16>}, {pipeline_mode = #tpu.pipeline_mode<synchronous>, transform_indices = @transform_2, window_bounds = array<i64: 256, 16>}, {pipeline_mode = #tpu.pipeline_mode<synchronous>, transform_indices = @transform_3, window_bounds = array<i64: 16, 256>}, {pipeline_mode = #tpu.pipeline_mode<synchronous>, transform_indices = @transform_4, window_bounds = array<i64: 16, 256>}, {pipeline_mode = #tpu.pipeline_mode<synchronous>, transform_indices = @transform_5, window_bounds = array<i64: 256, 16>}, {pipeline_mode = #tpu.pipeline_mode<synchronous>, transform_indices = @transform_6, window_bounds = array<i64: 1, 1>}, {pipeline_mode = #tpu.pipeline_mode<synchronous>, transform_indices = @transform_7, window_bounds = array<i64: 16, 16>}]} {
    %c0_i32 = arith.constant 0 : i32
    %0 = arith.cmpi eq, %arg0, %c0_i32 : i32
    %1 = arith.extui %0 : i1 to i32
    %c0_i32_0 = arith.constant 0 : i32
    %2 = arith.cmpi ne, %1, %c0_i32_0 : i32
    scf.if %2 {
      %cst_35 = arith.constant 0.000000e+00 : f32
      %51 = vector.broadcast %cst_35 : f32 to vector<1x1xf32>
      %c0_36 = arith.constant 0 : index
      %c0_37 = arith.constant 0 : index
      %52 = vector.load %arg8[%c0_36, %c0_37] : memref<1x1xf32, #tpu.memory_space<vmem>>, vector<1x1xf32>
      tpu.vector_store %arg8[%c0_36, %c0_37], %51 {strides = array<i32>} : memref<1x1xf32, #tpu.memory_space<vmem>>, vector<1x1xf32>,
      %cst_38 = arith.constant 0.000000e+00 : f32
      %53 = vector.broadcast %cst_38 : f32 to vector<16x16xf32>
      %c0_39 = arith.constant 0 : index
      %c0_40 = arith.constant 0 : index
      %54 = vector.load %arg9[%c0_39, %c0_40] : memref<16x16xf32, #tpu.memory_space<vmem>>, vector<16x16xf32>
      tpu.vector_store %arg9[%c0_39, %c0_40], %53 {strides = array<i32>} : memref<16x16xf32, #tpu.memory_space<vmem>>, vector<16x16xf32>,
    } else {
    }
    %3 = arith.index_cast %arg0 : i32 to index
    %4 = memref.load %arg1[%3] : memref<6xi32, #tpu.memory_space<smem>>
    %c1_i32 = arith.constant 1 : i32
    %5 = arith.cmpi eq, %4, %c1_i32 : i32
    %c0 = arith.constant 0 : index
    %c0_1 = arith.constant 0 : index
    %c0_2 = arith.constant 0 : index
    %6 = vector.load %arg2[%c0, %c0_1, %c0_2] : memref<1x16x16xf32, #tpu.memory_space<vmem>>, vector<1x16x16xf32>
    %7 = vector.shape_cast %6 : vector<1x16x16xf32> to vector<16x16xf32>
    %c0_3 = arith.constant 0 : index
    %c0_4 = arith.constant 0 : index
    %c0_5 = arith.constant 0 : index
    %8 = vector.load %arg3[%c0_3, %c0_4, %c0_5] : memref<1x16x16xf32, #tpu.memory_space<vmem>>, vector<1x16x16xf32>
    %9 = vector.shape_cast %8 : vector<1x16x16xf32> to vector<16x16xf32>
    %10 = arith.subf %7, %9 : vector<16x16xf32>
    %11 = arith.mulf %10, %10 : vector<16x16xf32>
    %12 = vector.shape_cast %11 : vector<16x16xf32> to vector<1x16x16xf32>
    %cst = arith.constant dense<0.000000e+00> : vector<1xf32>
    %13 = vector.multi_reduction <add>, %12, %cst [1, 2] : vector<1x16x16xf32> to vector<1xf32>
    %14 = vector.shape_cast %13 : vector<1xf32> to vector<1x1x1xf32>
    %15 = vector.extract %14[0, 0, 0] : f32 from vector<1x1x1xf32>
    %cst_6 = arith.constant -1.000000e+00 : f32
    %cst_7 = arith.constant 1.000000e+00 : f32
    %16 = arith.select %5, %cst_6, %cst_7 : f32
    %c0_8 = arith.constant 0 : index
    %c0_9 = arith.constant 0 : index
    %17 = vector.load %arg8[%c0_8, %c0_9] : memref<1x1xf32, #tpu.memory_space<vmem>>, vector<1x1xf32>
    %18 = arith.mulf %16, %15 : f32
    %cst_10 = arith.constant 3.906250e-03 : f32
    %19 = arith.mulf %18, %cst_10 : f32
    %20 = vector.broadcast %19 : f32 to vector<1x1xf32>
    %21 = arith.addf %17, %20 : vector<1x1xf32>
    %c0_11 = arith.constant 0 : index
    %c0_12 = arith.constant 0 : index
    %22 = vector.load %arg8[%c0_11, %c0_12] : memref<1x1xf32, #tpu.memory_space<vmem>>, vector<1x1xf32>
    tpu.vector_store %arg8[%c0_11, %c0_12], %21 {strides = array<i32>} : memref<1x1xf32, #tpu.memory_space<vmem>>, vector<1x1xf32>,
    %c0_13 = arith.constant 0 : index
    %c0_14 = arith.constant 0 : index
    %23 = vector.load %arg4[%c0_13, %c0_14] : memref<256x16xf32, #tpu.memory_space<vmem>>, vector<256x16xf32>
    %cst_15 = arith.constant dense<0.000000e+00> : vector<256x16xf32>
    %24 = tpu.matmul %23, %7, %cst_15 {dimension_numbers = #tpu.dot_dimension_numbers<[1], [0], [0], [1], [0, 0, 1, 1], [], []>} : vector<256x16xf32>, vector<16x16xf32>, vector<256x16xf32> -> vector<256x16xf32>
    %c0_16 = arith.constant 0 : index
    %c0_17 = arith.constant 0 : index
    %25 = vector.load %arg5[%c0_16, %c0_17] : memref<16x256xf32, #tpu.memory_space<vmem>>, vector<16x256xf32>
    %cst_18 = arith.constant dense<0.000000e+00> : vector<256x256xf32>
    %26 = tpu.matmul %24, %25, %cst_18 {dimension_numbers = #tpu.dot_dimension_numbers<[1], [0], [0], [1], [0, 0, 1, 1], [], []>} : vector<256x16xf32>, vector<16x256xf32>, vector<256x256xf32> -> vector<256x256xf32>
    %cst_19 = arith.constant 8.500000e-01 : f32
    %cst_20 = arith.constant 0.949999988 : f32
    %27 = arith.select %5, %cst_19, %cst_20 : f32
    %28 = vector.shape_cast %26 : vector<256x256xf32> to vector<1x256x256xf32>
    %cst_21 = arith.constant dense<0xFF800000> : vector<1xf32>
    %29 = vector.multi_reduction <maximumf>, %28, %cst_21 [1, 2] : vector<1x256x256xf32> to vector<1xf32>
    %30 = vector.shape_cast %29 : vector<1xf32> to vector<1x1x1xf32>
    %31 = vector.extract %30[0, 0, 0] : f32 from vector<1x1x1xf32>
    %32 = arith.mulf %31, %27 : f32
    %33 = vector.broadcast %32 : f32 to vector<256x256xf32>
    %34 = arith.cmpf oge, %26, %33 : vector<256x256xf32>
    %35 = arith.extui %34 : vector<256x256xi1> to vector<256x256xi32>
    %36 = arith.sitofp %35 : vector<256x256xi32> to vector<256x256xf32>
    %c0_22 = arith.constant 0 : index
    %c0_23 = arith.constant 0 : index
    %37 = vector.load %arg6[%c0_22, %c0_23] : memref<16x256xf32, #tpu.memory_space<vmem>>, vector<16x256xf32>
    %cst_24 = arith.constant dense<0.000000e+00> : vector<16x256xf32>
    %38 = tpu.matmul %37, %36, %cst_24 {dimension_numbers = #tpu.dot_dimension_numbers<[1], [0], [0], [1], [0, 0, 1, 1], [], []>} : vector<16x256xf32>, vector<256x256xf32>, vector<16x256xf32> -> vector<16x256xf32>
    %c0_25 = arith.constant 0 : index
    %c0_26 = arith.constant 0 : index
    %39 = vector.load %arg7[%c0_25, %c0_26] : memref<256x16xf32, #tpu.memory_space<vmem>>, vector<256x16xf32>
    %cst_27 = arith.constant dense<0.000000e+00> : vector<16x16xf32>
    %40 = tpu.matmul %38, %39, %cst_27 {dimension_numbers = #tpu.dot_dimension_numbers<[1], [0], [0], [1], [0, 0, 1, 1], [], []>} : vector<16x256xf32>, vector<256x16xf32>, vector<16x16xf32> -> vector<16x16xf32>
    %cst_28 = arith.constant 0.000000e+00 : f32
    %41 = vector.broadcast %cst_28 : f32 to vector<16x16xf32>
    %42 = arith.cmpf ogt, %40, %41 : vector<16x16xf32>
    %43 = arith.extui %42 : vector<16x16xi1> to vector<16x16xi32>
    %44 = arith.sitofp %43 : vector<16x16xi32> to vector<16x16xf32>
    %cst_29 = arith.constant -1.000000e+00 : f32
    %cst_30 = arith.constant 1.000000e+00 : f32
    %45 = arith.select %5, %cst_29, %cst_30 : f32
    %c0_31 = arith.constant 0 : index
    %c0_32 = arith.constant 0 : index
    %46 = vector.load %arg9[%c0_31, %c0_32] : memref<16x16xf32, #tpu.memory_space<vmem>>, vector<16x16xf32>
    %47 = vector.broadcast %45 : f32 to vector<16x16xf32>
    %48 = arith.mulf %47, %44 : vector<16x16xf32>
    %49 = arith.addf %46, %48 : vector<16x16xf32>
    %c0_33 = arith.constant 0 : index
    %c0_34 = arith.constant 0 : index
    %50 = vector.load %arg9[%c0_33, %c0_34] : memref<16x16xf32, #tpu.memory_space<vmem>>, vector<16x16xf32>
    tpu.vector_store %arg9[%c0_33, %c0_34], %49 {strides = array<i32>} : memref<16x16xf32, #tpu.memory_space<vmem>>, vector<16x16xf32>,
    return
  }
  func.func @transform_0(%arg0: i32, %arg1: memref<6xi32, #tpu.memory_space<smem>>) -> (i32, i32, i32) {
    %c0_i32 = arith.constant 0 : i32
    %c0_i32_0 = arith.constant 0 : i32
    %c0_i32_1 = arith.constant 0 : i32
    return %arg0, %c0_i32, %c0_i32_0 : i32, i32, i32
  }
  func.func @transform_1(%arg0: i32, %arg1: memref<6xi32, #tpu.memory_space<smem>>) -> (i32, i32, i32) {
    %c0_i32 = arith.constant 0 : i32
    %c0_i32_0 = arith.constant 0 : i32
    %c0_i32_1 = arith.constant 0 : i32
    return %arg0, %c0_i32, %c0_i32_0 : i32, i32, i32
  }
  func.func @transform_2(%arg0: i32, %arg1: memref<6xi32, #tpu.memory_space<smem>>) -> (i32, i32) {
    %c0_i32 = arith.constant 0 : i32
    %c0_i32_0 = arith.constant 0 : i32
    %c0_i32_1 = arith.constant 0 : i32
    return %c0_i32, %c0_i32_0 : i32, i32
  }
  func.func @transform_3(%arg0: i32, %arg1: memref<6xi32, #tpu.memory_space<smem>>) -> (i32, i32) {
    %c0_i32 = arith.constant 0 : i32
    %c0_i32_0 = arith.constant 0 : i32
    %c0_i32_1 = arith.constant 0 : i32
    return %c0_i32, %c0_i32_0 : i32, i32
  }
  func.func @transform_4(%arg0: i32, %arg1: memref<6xi32, #tpu.memory_space<smem>>) -> (i32, i32) {
    %c0_i32 = arith.constant 0 : i32
    %c0_i32_0 = arith.constant 0 : i32
    %c0_i32_1 = arith.constant 0 : i32
    return %c0_i32, %c0_i32_0 : i32, i32
  }
  func.func @transform_5(%arg0: i32, %arg1: memref<6xi32, #tpu.memory_space<smem>>) -> (i32, i32) {
    %c0_i32 = arith.constant 0 : i32
    %c0_i32_0 = arith.constant 0 : i32
    %c0_i32_1 = arith.constant 0 : i32
    return %c0_i32, %c0_i32_0 : i32, i32
  }
  func.func @transform_6(%arg0: i32, %arg1: memref<6xi32, #tpu.memory_space<smem>>) -> (i32, i32) {
    %c0_i32 = arith.constant 0 : i32
    %c0_i32_0 = arith.constant 0 : i32
    %c0_i32_1 = arith.constant 0 : i32
    return %c0_i32, %c0_i32_0 : i32, i32
  }
  func.func @transform_7(%arg0: i32, %arg1: memref<6xi32, #tpu.memory_space<smem>>) -> (i32, i32) {
    %c0_i32 = arith.constant 0 : i32
    %c0_i32_0 = arith.constant 0 : i32
    %c0_i32_1 = arith.constant 0 : i32
    return %c0_i32, %c0_i32_0 : i32, i32
  }
}

module attributes {stable_mosaic.version = 11 : i64} {
  func.func @_weighted_self_sse_kernel(%arg0: i32, %arg1: i32, %arg2: memref<256x256xf32, #tpu.memory_space<vmem>>, %arg3: memref<256x256xf32, #tpu.memory_space<vmem>>, %arg4: memref<1x256xf32, #tpu.memory_space<vmem>>, %arg5: memref<1x1xf32, #tpu.memory_space<vmem>>) attributes {dimension_semantics = [#tpu.dimension_semantics<arbitrary>, #tpu.dimension_semantics<arbitrary>], iteration_bounds = array<i64: 1, 1>, scalar_prefetch = 0 : i64, scratch_operands = 0 : i64, tpu.core_type = #tpu.core_type<tc>, window_params = [{transform_indices = @transform_0, window_bounds = array<i64: 256, 256>}, {transform_indices = @transform_1, window_bounds = array<i64: 256, 256>}, {transform_indices = @transform_2, window_bounds = array<i64: 1, 256>}, {pipeline_mode = #tpu.pipeline_mode<synchronous>, transform_indices = @transform_3, window_bounds = array<i64: 1, 1>}]} {
    %c0_i32 = arith.constant 0 : i32
    %0 = arith.cmpi eq, %arg0, %c0_i32 : i32
    %c0_i32_0 = arith.constant 0 : i32
    %1 = arith.cmpi eq, %arg1, %c0_i32_0 : i32
    %2 = arith.andi %0, %1 : i1
    %3 = arith.extui %2 : i1 to i32
    %c0_i32_1 = arith.constant 0 : i32
    %4 = arith.cmpi ne, %3, %c0_i32_1 : i32
    scf.if %4 {
      %cst_13 = arith.constant 0.000000e+00 : f32
      %20 = vector.broadcast %cst_13 : f32 to vector<1x1xf32>
      %c0_14 = arith.constant 0 : index
      %c0_15 = arith.constant 0 : index
      %21 = vector.load %arg5[%c0_14, %c0_15] : memref<1x1xf32, #tpu.memory_space<vmem>>, vector<1x1xf32>
      tpu.vector_store %arg5[%c0_14, %c0_15], %20 {strides = array<i32>} : memref<1x1xf32, #tpu.memory_space<vmem>>, vector<1x1xf32>,
    } else {
    }
    %c0 = arith.constant 0 : index
    %c0_2 = arith.constant 0 : index
    %5 = vector.load %arg2[%c0, %c0_2] : memref<256x256xf32, #tpu.memory_space<vmem>>, vector<256x256xf32>
    %c0_3 = arith.constant 0 : index
    %c0_4 = arith.constant 0 : index
    %6 = vector.load %arg3[%c0_3, %c0_4] : memref<256x256xf32, #tpu.memory_space<vmem>>, vector<256x256xf32>
    %7 = arith.subf %5, %6 : vector<256x256xf32>
    %8 = arith.mulf %7, %7 : vector<256x256xf32>
    %cst = arith.constant dense<0.000000e+00> : vector<256xf32>
    %9 = vector.multi_reduction <add>, %8, %cst [0] : vector<256x256xf32> to vector<256xf32>
    %10 = vector.shape_cast %9 : vector<256xf32> to vector<1x256xf32>
    %c0_5 = arith.constant 0 : index
    %c0_6 = arith.constant 0 : index
    %11 = vector.load %arg5[%c0_5, %c0_6] : memref<1x1xf32, #tpu.memory_space<vmem>>, vector<1x1xf32>
    %c0_7 = arith.constant 0 : index
    %c0_8 = arith.constant 0 : index
    %12 = vector.load %arg4[%c0_7, %c0_8] : memref<1x256xf32, #tpu.memory_space<vmem>>, vector<1x256xf32>
    %13 = arith.mulf %10, %12 : vector<1x256xf32>
    %cst_9 = arith.constant dense<0.000000e+00> : vector<1xf32>
    %14 = vector.multi_reduction <add>, %13, %cst_9 [1] : vector<1x256xf32> to vector<1xf32>
    %15 = vector.shape_cast %14 : vector<1xf32> to vector<1x1xf32>
    %cst_10 = arith.constant 3.906250e-03 : f32
    %16 = vector.broadcast %cst_10 : f32 to vector<1x1xf32>
    %17 = arith.mulf %15, %16 : vector<1x1xf32>
    %18 = arith.addf %11, %17 : vector<1x1xf32>
    %c0_11 = arith.constant 0 : index
    %c0_12 = arith.constant 0 : index
    %19 = vector.load %arg5[%c0_11, %c0_12] : memref<1x1xf32, #tpu.memory_space<vmem>>, vector<1x1xf32>
    tpu.vector_store %arg5[%c0_11, %c0_12], %18 {strides = array<i32>} : memref<1x1xf32, #tpu.memory_space<vmem>>, vector<1x1xf32>,
    return
  }
  func.func @transform_0(%arg0: i32, %arg1: i32) -> (i32, i32) {
    %c0_i32 = arith.constant 0 : i32
    return %arg1, %arg0 : i32, i32
  }
  func.func @transform_1(%arg0: i32, %arg1: i32) -> (i32, i32) {
    %c0_i32 = arith.constant 0 : i32
    return %arg1, %arg0 : i32, i32
  }
  func.func @transform_2(%arg0: i32, %arg1: i32) -> (i32, i32) {
    %c0_i32 = arith.constant 0 : i32
    %c0_i32_0 = arith.constant 0 : i32
    return %c0_i32, %arg0 : i32, i32
  }
  func.func @transform_3(%arg0: i32, %arg1: i32) -> (i32, i32) {
    %c0_i32 = arith.constant 0 : i32
    %c0_i32_0 = arith.constant 0 : i32
    %c0_i32_1 = arith.constant 0 : i32
    return %c0_i32, %c0_i32_0 : i32, i32
  }
}

</mosaic_0001>

<bundles_post_ra>
// kernel: attn_loss_forward.2
= control target key start
LH: loop header
LB: loop body
LE: loop exit
PB: predicated region body
PF: predicated region fallthrough
CT: control target
= control target key end

     0   :  { %s2810_s0 = inlined_call_operand.vmem [shape: s32[6], index: 0, kind: input, shape index: {}]   ;;  %s2811_s1 = inlined_call_operand.vmem [shape: f32[6,16,16], index: 1, kind: input, shape index: {}]   ;;  %s2812_s2 = inlined_call_operand.vmem [shape: f32[6,16,16], index: 2, kind: input, shape index: {}]   ;;  %s2813_s3 = inlined_call_operand.vmem [shape: f32[256,16], index: 3, kind: input, shape index: {}]   ;;  %s2814_s4 = inlined_call_operand.vmem [shape: f32[16,256], index: 4, kind: input, shape index: {}]   ;;  %s2815_s5 = inlined_call_operand.vmem [shape: f32[16,256], index: 5, kind: input, shape index: {}]   ;;  %s2816_s6 = inlined_call_operand.vmem [shape: f32[256,16], index: 6, kind: input, shape index: {}]   ;;  %s2817_s7 = inlined_call_operand.hbm [shape: f32[1,1], index: 7, kind: output, shape index: {0}]   ;;  %s2818_s8 = inlined_call_operand.vmem [shape: f32[16,16], index: 8, kind: output, shape index: {1}]  }
   0x1   :  { %s14_s29 = sshll.u32 %s2810_s0, 4  ;;  %s15_s29 = int_to_ptr.vmem [resolvable:$true] %s14_s29 }
   0x2   :  { %s1930_s30 = scalar_lea.vmem %s15_s29, 16  ;;  %p1935_p1 = scmp.lt.s32.totalorder %s15_s29, %s15_s29 }
   0x3   :  { %p1931_p0 = scmp.ne.s32.totalorder %s15_s29, %s1930_s30  ;;  %p1936_p2 = scmp.lt.s32.totalorder %s1930_s30, %s1930_s30 }
   0x5   :  { %p1937_p3 = por %p1936_p2, %p1935_p1 }
   0x7   :  { %p1938_p4 = pnand %p1937_p3, %p1931_p0 }
   0x9   :  { %1941 = shalt.err (!%p1938_p4)  }
   0xa   :  { %s1980_s9 = smov [#allocation3]  }
   0xb   :  { %17 = dma.vmem_to_smem %s15_s29, 16, %s1980_s9, [#allocation2] }
   0xc   :  { %1970 = dma.done.wait [#allocation2], 16 }
   0xd   :  { %1971 = vsyncadd [#allocation2], 4294967280 }
   0xe   :  { %19 = sfence }
   0xf   :  { %20 = vsyncpa [#allocation5], 0  ;;  %s2033_s10 = smov 0  }
  0x10 LB: > { %s2039_s0 = sadd.s32 4294967295, %s1978_s10   ;;  %p1577_p5 = scmp.ge.s32.totalorder %s1978_s10, 1  ;;  %s1978_s10 = sphi %s2033_s10, %s26_s10  }
  0x11   : > { %p248_p6 = scmp.lt.s32.totalorder %s1978_s10, 7 }
  0x13   : > { %p249_p7 = pnand %p1577_p5, %p248_p6 }
  0x15   : > { %252 = sbr.rel (%p249_p7) target bundleno = 1236 (0x4d4), region = 44 }
  0x1a   : > { %p280_p8 = scmp.lt.s32.totalorder %s2039_s0, 5  ;;  %p1582_p9 = scmp.ne.s32.totalorder %s2039_s0, 0 }
  0x1c   : > { %s281_s11 = scalar_select %p280_p8, %s2039_s0, 5 }
  0x1d   : > { %293 = sbr.rel (%p1582_p9) target bundleno = 37 (0x25), region = 48 }
  0x1e   : > { %s1781_s12 = sshll.u32 %s281_s11, 4 }
  0x1f   : > { %s284_s15 = scalar_lea.vmem %s2811_s1, %s1781_s12  ;;  %s2051_s18 = scalar_lea.vmem %s2812_s2, %s1781_s12 }
  0x22   : > { %vm294_vm0 = vcmask 0   ;;  %vm296_vm1 = vcmask 130048   ;;  %v1981_v0 = vmov 0.0  }
  0x23   : > { %295 = vst.msk [vmem:[#allocation4] sm:$0x1] %vm294_vm0, %v1981_v0 }
  0x24   : > { %297 = vst.msk [vmem:[%s2818_s8] sm:$0xff] %vm296_vm1, %v1981_v0  ;;  %298 = vst.msk [vmem:[%s2818_s8 + $0x8] sm:$0xff] %vm296_vm1, %v1981_v0 }
  0x25 PF: > { %v2060_v1 = vld [vmem:[%s284_s15 + $0x8] sm:$0xff]  ;;  %v2062_v2 = vld [vmem:[%s284_s15] sm:$0xff]  ;;  %vm309_vm2 = vcmask 130048   ;;  %v332_v5 = vld [vmem:[%s2813_s3 + $0x10] sm:$0xff]  ;;  %v2819_v39 = vmov 0.0   ;;  %vm328_vm3 = vcmask 0  }
  0x26   : > { %v330_v3 = vld [vmem:[%s2813_s3] sm:$0xff]  ;;  %1855 = vmatprep.subr.mxu0 %v2060_v1  ;;  %v331_v4 = vld [vmem:[%s2813_s3 + $0x8] sm:$0xff]  ;;  %v333_v6 = vld [vmem:[%s2813_s3 + $0x18] sm:$0xff]  ;;  %847 = vmatprep.mubr.f32.mxu1 %v2819_v39  ;;  %p1915_p11 = scmp.eq.s32.totalorder %s2039_s0, 5  ;;  %s1984_s13 = smov [#allocation4]  }
  0x27   : > { %1859 = vmatprep.mubr.msk.f32.mxu0 %vm309_vm2, %v330_v3  ;;  %1856 = vmatpush3.msra.mxu0 %v2060_v1  ;;  %v334_v7 = vld [vmem:[%s2813_s3 + $0x20] sm:$0xff]  ;;  %v335_v8 = vld [vmem:[%s2813_s3 + $0x28] sm:$0xff]  ;;  %v336_v9 = vld [vmem:[%s2813_s3 + $0x30] sm:$0xff] }
  0x28   : > { %1857 = vmatprep.subr.mxu0 %v2062_v2  ;;  %v686_v10 = vld [vmem:[%s2814_s4 + $0x18] sm:$0xff]  ;;  %v338_v12 = vld [vmem:[%s2813_s3 + $0x40] sm:$0xff]  ;;  %v339_v13 = vld [vmem:[%s2813_s3 + $0x48] sm:$0xff] }
  0x29   : > { %1858 = vmatpush3.msra.mxu0 %v2062_v2  ;;  %811 = vmatprep.subr.mxu1 %v686_v10  ;;  %v337_v11 = vld [vmem:[%s2813_s3 + $0x38] sm:$0xff]  ;;  %v340_v14 = vld [vmem:[%s2813_s3 + $0x50] sm:$0xff]  ;;  %v342_v16 = vld [vmem:[%s2813_s3 + $0x60] sm:$0xff] }
  0x2a   : > { %1860 = vmatmul.mubr.msk.f32.vlgmr.msra.gmra.mxu0 %vm309_vm2, %v331_v4  ;;  %v341_v15 = vld [vmem:[%s2813_s3 + $0x58] sm:$0xff]  ;;  %v343_v17 = vld [vmem:[%s2813_s3 + $0x68] sm:$0xff]  ;;  %v344_v18 = vld [vmem:[%s2813_s3 + $0x70] sm:$0xff] }
  0x2b   : > { %1862 = vmatprep.mubr.msk.f32.mxu0 %vm309_vm2, %v332_v5  ;;  %v345_v19 = vld [vmem:[%s2813_s3 + $0x78] sm:$0xff]  ;;  %v346_v20 = vld [vmem:[%s2813_s3 + $0x80] sm:$0xff]  ;;  %v347_v21 = vld [vmem:[%s2813_s3 + $0x88] sm:$0xff] }
  0x2c   : > { %v348_v22 = vld [vmem:[%s2813_s3 + $0x90] sm:$0xff]  ;;  %v349_v23 = vld [vmem:[%s2813_s3 + $0x98] sm:$0xff]  ;;  %v350_v24 = vld [vmem:[%s2813_s3 + $0xa0] sm:$0xff] }
  0x2d   : > { %v351_v25 = vld [vmem:[%s2813_s3 + $0xa8] sm:$0xff]  ;;  %v352_v26 = vld [vmem:[%s2813_s3 + $0xb0] sm:$0xff]  ;;  %v353_v27 = vld [vmem:[%s2813_s3 + $0xb8] sm:$0xff] }
  0x2e   : > { %1863 = vmatmul.mubr.msk.f32.gmra.mxu0 %vm309_vm2, %v333_v6  ;;  %v354_v28 = vld [vmem:[%s2813_s3 + $0xc0] sm:$0xff]  ;;  %v355_v29 = vld [vmem:[%s2813_s3 + $0xc8] sm:$0xff]  ;;  %v356_v30 = vld [vmem:[%s2813_s3 + $0xd0] sm:$0xff] }
  0x2f   : > { %1865 = vmatprep.mubr.msk.f32.mxu0 %vm309_vm2, %v334_v7  ;;  %v357_v31 = vld [vmem:[%s2813_s3 + $0xd8] sm:$0xff]  ;;  %v358_v32 = vld [vmem:[%s2813_s3 + $0xe0] sm:$0xff]  ;;  %v359_v33 = vld [vmem:[%s2813_s3 + $0xe8] sm:$0xff] }
  0x30   : > { %v360_v34 = vld [vmem:[%s2813_s3 + $0xf0] sm:$0xff]  ;;  %v361_v35 = vld [vmem:[%s2813_s3 + $0xf8] sm:$0xff]  ;;  %v684_v37 = vld [vmem:[%s2814_s4 + $0x8] sm:$0xff] }
  0x31   : > { %v685_v36 = vld [vmem:[%s2814_s4 + $0x10] sm:$0xff]  ;;  %v683_v38 = vld [vmem:[%s2814_s4] sm:$0xff] }
  0x32   : > { %1866 = vmatmul.mubr.msk.f32.gmra.mxu0 %vm309_vm2, %v335_v8  ;;  %812 = vmatpush1.msra.mxu1 %v685_v36  ;;  %v303_v10 = vld [vmem:[%s2051_s18] sm:$0xff] }
  0x33   : > { %1868 = vmatprep.mubr.msk.f32.mxu0 %vm309_vm2, %v336_v9  ;;  %813 = vmatprep.subr.mxu1 %v684_v37 }
  0x34   : > { %814 = vmatpush1.msra.mxu1 %v683_v38 }
  0x36   : > { %1869 = vmatmul.mubr.msk.f32.gmra.mxu0 %vm309_vm2, %v337_v11  ;;  %v304_v11 = vld [vmem:[%s2051_s18 + $0x8] sm:$0xff]  ;;  %s299_s18 = sld [smem:[#allocation3 + %s2039_s0]] }
  0x37   : > { %1871 = vmatprep.mubr.msk.f32.mxu0 %vm309_vm2, %v338_v12  ;;  %v305_v12 = vsub.f32 %v2062_v2, %v303_v10 }
  0x3a   : > { %1872 = vmatmul.mubr.msk.f32.gmra.mxu0 %vm309_vm2, %v339_v13  ;;  %v306_v13 = vsub.f32 %v2060_v1, %v304_v11 }
  0x3b   : > { %1874 = vmatprep.mubr.msk.f32.mxu0 %vm309_vm2, %v340_v14  ;;  %v307_v14 = vmul.f32 %v305_v12, %v305_v12 }
  0x3c   : > { %p300_p10 = scmp.eq.s32.totalorder %s299_s18, 1  ;;  %s1517_s18 = sshll.u32 %s1984_s13, 4  ;;  %s1518_s18 = int_to_ptr.vmem [resolvable:$true] %s1517_s18 }
  0x3d   : > { %p1949_p1 = scmp.lt.s32.totalorder %s1518_s18, %s1518_s18 }
  0x3e   : > { %1875 = vmatmul.mubr.msk.f32.gmra.mxu0 %vm309_vm2, %v341_v15  ;;  %v308_v15 = vmul.f32 %v306_v13, %v306_v13  ;;  %s2472_s14 = scalar_select %p300_p10, -1.0, 1.0 }
  0x3f   : > { %1877 = vmatprep.mubr.msk.f32.mxu0 %vm309_vm2, %v342_v16  ;;  %v310_v16 = vsel %vm309_vm2, %v307_v14, 0.0  ;;  %s1040_s21 = scalar_select %p300_p10, 0.85, 0.95 }
  0x42   : > { %1878 = vmatmul.mubr.msk.f32.gmra.mxu0 %vm309_vm2, %v343_v17  ;;  %v311_v17 = vsel %vm309_vm2, %v308_v15, 0.0 }
  0x43   : > { %1880 = vmatprep.mubr.msk.f32.mxu0 %vm309_vm2, %v344_v18  ;;  %v312_v18 = vadd.f32 %v311_v17, %v310_v16 }
  0x45   : > { %313 = vadd.xlane.f32.xlu0 %v312_v18 }
  0x46   : > { %1881 = vmatmul.mubr.msk.f32.gmra.mxu0 %vm309_vm2, %v345_v19 }
  0x47   : > { %1883 = vmatprep.mubr.msk.f32.mxu0 %vm309_vm2, %v346_v20 }
  0x4a   : > { %1884 = vmatmul.mubr.msk.f32.gmra.mxu0 %vm309_vm2, %v347_v21 }
  0x4b   : > { %1886 = vmatprep.mubr.msk.f32.mxu0 %vm309_vm2, %v348_v22 }
  0x4e   : > { %1887 = vmatmul.mubr.msk.f32.gmra.mxu0 %vm309_vm2, %v349_v23 }
  0x4f   : > { %1889 = vmatprep.mubr.msk.f32.mxu0 %vm309_vm2, %v350_v24 }
  0x52   : > { %1890 = vmatmul.mubr.msk.f32.gmra.mxu0 %vm309_vm2, %v351_v25 }
  0x53   : > { %1892 = vmatprep.mubr.msk.f32.mxu0 %vm309_vm2, %v352_v26 }
  0x56   : > { %1893 = vmatmul.mubr.msk.f32.gmra.mxu0 %vm309_vm2, %v353_v27 }
  0x57   : > { %1895 = vmatprep.mubr.msk.f32.mxu0 %vm309_vm2, %v354_v28 }
  0x5a   : > { %1896 = vmatmul.mubr.msk.f32.gmra.mxu0 %vm309_vm2, %v355_v29 }
  0x5b   : > { %1898 = vmatprep.mubr.msk.f32.mxu0 %vm309_vm2, %v356_v30 }
  0x5e   : > { %1899 = vmatmul.mubr.msk.f32.gmra.mxu0 %vm309_vm2, %v357_v31 }
  0x5f   : > { %1901 = vmatprep.mubr.msk.f32.mxu0 %vm309_vm2, %v358_v32 }
  0x62   : > { %1902 = vmatmul.mubr.msk.f32.gmra.mxu0 %vm309_vm2, %v359_v33 }
  0x63   : > { %1904 = vmatprep.mubr.msk.f32.mxu0 %vm309_vm2, %v360_v34 }
  0x66   : > { %1905 = vmatmul.mubr.msk.f32.gmra.mxu0 %vm309_vm2, %v361_v35 }
  0xea   : > { %v1861_v40 = vpop.f32.mrf.mxu0 }
  0xec   : > { %v524_v41 = vpop.f32.mrf.mxu0 }
  0xed   : > { %1615 = vmatmul.mubr.msk.f32.vlgmr.msra.gmra.mxu1 %vm309_vm2, %v524_v41 }
  0xee   : > { %853 = vmatprep.mubr.f32.mxu1 %v2819_v39  ;;  %v1864_v42 = vpop.f32.mrf.mxu0 }
  0xf0   : > { %v534_v43 = vpop.f32.mrf.mxu0 }
  0xf1   : > { %1616 = vmatmul.mubr.msk.f32.gmra.mxu1 %vm309_vm2, %v1861_v40 }
  0xf2   : > { %859 = vmatprep.mubr.f32.mxu1 %v2819_v39  ;;  %v1867_v44 = vpop.f32.mrf.mxu0 }
  0xf4   : > { %v544_v45 = vpop.f32.mrf.mxu0 }
  0xf5   : > { %1617 = vmatmul.mubr.msk.f32.gmra.mxu1 %vm309_vm2, %v534_v43 }
  0xf6   : > { %865 = vmatprep.mubr.f32.mxu1 %v2819_v39  ;;  %v1870_v46 = vpop.f32.mrf.mxu0 }
  0xf8   : > { %v554_v47 = vpop.f32.mrf.mxu0 }
  0xf9   : > { %1618 = vmatmul.mubr.msk.f32.gmra.mxu1 %vm309_vm2, %v1864_v42 }
  0xfa   : > { %871 = vmatprep.mubr.f32.mxu1 %v2819_v39  ;;  %v1873_v48 = vpop.f32.mrf.mxu0 }
  0xfc   : > { %v564_v49 = vpop.f32.mrf.mxu0 }
  0xfd   : > { %1619 = vmatmul.mubr.msk.f32.gmra.mxu1 %vm309_vm2, %v544_v45 }
  0xfe   : > { %877 = vmatprep.mubr.f32.mxu1 %v2819_v39  ;;  %v1876_v50 = vpop.f32.mrf.mxu0 }
 0x100   : > { %v574_v51 = vpop.f32.mrf.mxu0 }
 0x101   : > { %1620 = vmatmul.mubr.msk.f32.gmra.mxu1 %vm309_vm2, %v1867_v44 }
 0x102   : > { %883 = vmatprep.mubr.f32.mxu1 %v2819_v39  ;;  %v1879_v52 = vpop.f32.mrf.mxu0 }
 0x104   : > { %v584_v53 = vpop.f32.mrf.mxu0 }
 0x105   : > { %1621 = vmatmul.mubr.msk.f32.gmra.mxu1 %vm309_vm2, %v554_v47 }
 0x106   : > { %889 = vmatprep.mubr.f32.mxu1 %v2819_v39  ;;  %v1882_v54 = vpop.f32.mrf.mxu0 }
 0x108   : > { %v594_v55 = vpop.f32.mrf.mxu0 }
 0x109   : > { %1622 = vmatmul.mubr.msk.f32.gmra.mxu1 %vm309_vm2, %v1870_v46 }
 0x10a   : > { %895 = vmatprep.mubr.f32.mxu1 %v2819_v39  ;;  %v1885_v56 = vpop.f32.mrf.mxu0 }
 0x10c   : > { %v604_v57 = vpop.f32.mrf.mxu0 }
 0x10d   : > { %1623 = vmatmul.mubr.msk.f32.gmra.mxu1 %vm309_vm2, %v564_v49 }
 0x10e   : > { %901 = vmatprep.mubr.f32.mxu1 %v2819_v39  ;;  %v1888_v58 = vpop.f32.mrf.mxu0 }
 0x110   : > { %v614_v59 = vpop.f32.mrf.mxu0 }
 0x111   : > { %1624 = vmatmul.mubr.msk.f32.gmra.mxu1 %vm309_vm2, %v1873_v48 }
 0x112   : > { %907 = vmatprep.mubr.f32.mxu1 %v2819_v39  ;;  %v1891_v60 = vpop.f32.mrf.mxu0 }
 0x114   : > { %v624_v61 = vpop.f32.mrf.mxu0 }
 0x115   : > { %1625 = vmatmul.mubr.msk.f32.gmra.mxu1 %vm309_vm2, %v574_v51 }
 0x116   : > { %913 = vmatprep.mubr.f32.mxu1 %v2819_v39  ;;  %v1894_v62 = vpop.f32.mrf.mxu0 }
 0x118   : > { %v634_v63 = vpop.f32.mrf.mxu0 }
 0x119   : > { %1626 = vmatmul.mubr.msk.f32.gmra.mxu1 %vm309_vm2, %v1876_v50 }
 0x11a   : > { %919 = vmatprep.mubr.f32.mxu1 %v2819_v39  ;;  %v1897_v0 = vpop.f32.mrf.mxu0 }
 0x11c   : > { %v644_v3 = vpop.f32.mrf.mxu0 }
 0x11d   : > { %1627 = vmatmul.mubr.msk.f32.gmra.mxu1 %vm309_vm2, %v584_v53 }
 0x11e   : > { %925 = vmatprep.mubr.f32.mxu1 %v2819_v39  ;;  %v1900_v4 = vpop.f32.mrf.mxu0 }
 0x120   : > { %v654_v5 = vpop.f32.mrf.mxu0 }
 0x121   : > { %1628 = vmatmul.mubr.msk.f32.gmra.mxu1 %vm309_vm2, %v1879_v52 }
 0x122   : > { %931 = vmatprep.mubr.f32.mxu1 %v2819_v39  ;;  %v1903_v6 = vpop.f32.mrf.mxu0 }
 0x124   : > { %v664_v7 = vpop.f32.mrf.mxu0 }
 0x125   : > { %1629 = vmatmul.mubr.msk.f32.gmra.mxu1 %vm309_vm2, %v594_v55 }
 0x126   : > { %937 = vmatprep.mubr.f32.mxu1 %v2819_v39  ;;  %v1906_v8 = vpop.f32.mrf.mxu0 }
 0x128   : > { %v674_v9 = vpop.f32.mrf.mxu0 }
 0x129   : > { %1630 = vmatmul.mubr.msk.f32.gmra.mxu1 %vm309_vm2, %v1882_v54 }
 0x12a   : > { %943 = vmatprep.mubr.f32.mxu1 %v2819_v39 }
 0x12d   : > { %1631 = vmatmul.mubr.msk.f32.gmra.mxu1 %vm309_vm2, %v604_v57 }
 0x12e   : > { %949 = vmatprep.mubr.f32.mxu1 %v2819_v39 }
 0x131   : > { %1632 = vmatmul.mubr.msk.f32.gmra.mxu1 %vm309_vm2, %v1885_v56 }
 0x132   : > { %955 = vmatprep.mubr.f32.mxu1 %v2819_v39 }
 0x135   : > { %1633 = vmatmul.mubr.msk.f32.gmra.mxu1 %vm309_vm2, %v614_v59 }
 0x136   : > { %961 = vmatprep.mubr.f32.mxu1 %v2819_v39 }
 0x139   : > { %1634 = vmatmul.mubr.msk.f32.gmra.mxu1 %vm309_vm2, %v1888_v58 }
 0x13a   : > { %967 = vmatprep.mubr.f32.mxu1 %v2819_v39 }
 0x13d   : > { %1635 = vmatmul.mubr.msk.f32.gmra.mxu1 %vm309_vm2, %v624_v61 }
 0x13e   : > { %973 = vmatprep.mubr.f32.mxu1 %v2819_v39 }
 0x141   : > { %1636 = vmatmul.mubr.msk.f32.gmra.mxu1 %vm309_vm2, %v1891_v60 }
 0x142   : > { %979 = vmatprep.mubr.f32.mxu1 %v2819_v39 }
 0x145   : > { %1637 = vmatmul.mubr.msk.f32.gmra.mxu1 %vm309_vm2, %v634_v63 }
 0x146   : > { %985 = vmatprep.mubr.f32.mxu1 %v2819_v39 }
 0x149   : > { %1638 = vmatmul.mubr.msk.f32.gmra.mxu1 %vm309_vm2, %v1894_v62 }
 0x14a   : > { %991 = vmatprep.mubr.f32.mxu1 %v2819_v39 }
 0x14d   : > { %1639 = vmatmul.mubr.msk.f32.gmra.mxu1 %vm309_vm2, %v644_v3 }
 0x14e   : > { %997 = vmatprep.mubr.f32.mxu1 %v2819_v39 }
 0x151   : > { %1640 = vmatmul.mubr.msk.f32.gmra.mxu1 %vm309_vm2, %v1897_v0 }
 0x152   : > { %1003 = vmatprep.mubr.f32.mxu1 %v2819_v39 }
 0x155   : > { %1641 = vmatmul.mubr.msk.f32.gmra.mxu1 %vm309_vm2, %v654_v5 }
 0x156   : > { %1009 = vmatprep.mubr.f32.mxu1 %v2819_v39 }
 0x159   : > { %1642 = vmatmul.mubr.msk.f32.gmra.mxu1 %vm309_vm2, %v1900_v4 }
 0x15a   : > { %1015 = vmatprep.mubr.f32.mxu1 %v2819_v39 }
 0x15d   : > { %1643 = vmatmul.mubr.msk.f32.gmra.mxu1 %vm309_vm2, %v664_v7 }
 0x15e   : > { %1021 = vmatprep.mubr.f32.mxu1 %v2819_v39 }
 0x161   : > { %1644 = vmatmul.mubr.msk.f32.gmra.mxu1 %vm309_vm2, %v1903_v6 }
 0x162   : > { %1027 = vmatprep.mubr.f32.mxu1 %v2819_v39 }
 0x165   : > { %1645 = vmatmul.mubr.msk.f32.gmra.mxu1 %vm309_vm2, %v674_v9 }
 0x166   : > { %1033 = vmatprep.mubr.f32.mxu1 %v2819_v39 }
 0x169   : > { %1646 = vmatmul.mubr.msk.f32.gmra.mxu1 %vm309_vm2, %v1906_v8 }
 0x1ad   : > { %v2278_v19 = vpop.f32.mrf.mxu1 }
 0x1ae   : > { %2838 = vst [vmem:[#allocation8_spill] sm:$0xff] %v2278_v19 }
 0x1af   : > { %v2280_v20 = vpop.f32.mrf.mxu1 }
 0x1b0   : > { %2839 = vst [vmem:[#allocation9_spill] sm:$0xff] %v2280_v20 }
 0x1b1   : > { %v2282_v21 = vpop.f32.mrf.mxu1 }
 0x1b2   : > { %2840 = vst [vmem:[#allocation10_spill] sm:$0xff] %v2282_v21 }
 0x1b3   : > { %v2284_v22 = vpop.f32.mrf.mxu1 }
 0x1b4   : > { %2841 = vst [vmem:[#allocation11_spill] sm:$0xff] %v2284_v22 }
 0x1b5   : > { %v2286_v23 = vpop.f32.mrf.mxu1 }
 0x1b6   : > { %2842 = vst [vmem:[#allocation12_spill] sm:$0xff] %v2286_v23  ;;  %v1041_v7 = vmax.f32 %v2278_v19, %v2286_v23 }
 0x1b7   : > { %v2288_v2 = vpop.f32.mrf.mxu1 }
 0x1b8   : > { %2843 = vst [vmem:[#allocation13_spill] sm:$0xff] %v2288_v2  ;;  %v1042_v5 = vmax.f32 %v2280_v20, %v2288_v2 }
 0x1b9   : > { %v2290_v1 = vpop.f32.mrf.mxu1 }
 0x1ba   : > { %v1043_v8 = vmax.f32 %v2282_v21, %v2290_v1 }
 0x1bb   : > { %v2292_v24 = vpop.f32.mrf.mxu1 }
 0x1bc   : > { %v1044_v9 = vmax.f32 %v2284_v22, %v2292_v24 }
 0x1bd   : > { %v2294_v25 = vpop.f32.mrf.mxu1 }
 0x1be   : > { %v1045_v12 = vmax.f32 %v1041_v7, %v2294_v25 }
 0x1bf   : > { %v2296_v26 = vpop.f32.mrf.mxu1 }
 0x1c0   : > { %v1046_v10 = vmax.f32 %v1042_v5, %v2296_v26 }
 0x1c1   : > { %v2298_v27 = vpop.f32.mrf.mxu1 }
 0x1c2   : > { %v1047_v13 = vmax.f32 %v1043_v8, %v2298_v27 }
 0x1c3   : > { %v2300_v28 = vpop.f32.mrf.mxu1 }
 0x1c4   : > { %v1048_v14 = vmax.f32 %v1044_v9, %v2300_v28 }
 0x1c5   : > { %v2302_v29 = vpop.f32.mrf.mxu1 }
 0x1c6   : > { %v1049_v17 = vmax.f32 %v1045_v12, %v2302_v29 }
 0x1c7   : > { %v2304_v30 = vpop.f32.mrf.mxu1 }
 0x1c8   : > { %v1050_v15 = vmax.f32 %v1046_v10, %v2304_v30 }
 0x1c9   : > { %v2306_v31 = vpop.f32.mrf.mxu1 }
 0x1ca   : > { %v1051_v18 = vmax.f32 %v1047_v13, %v2306_v31 }
 0x1cb   : > { %v2308_v32 = vpop.f32.mrf.mxu1 }
 0x1cc   : > { %v1052_v39 = vmax.f32 %v1048_v14, %v2308_v32 }
 0x1cd   : > { %v2310_v33 = vpop.f32.mrf.mxu1 }
 0x1ce   : > { %v1053_v7 = vmax.f32 %v1049_v17, %v2310_v33 }
 0x1cf   : > { %v2312_v34 = vpop.f32.mrf.mxu1 }
 0x1d0   : > { %v1054_v5 = vmax.f32 %v1050_v15, %v2312_v34 }
 0x1d1   : > { %v2314_v35 = vpop.f32.mrf.mxu1 }
 0x1d2   : > { %v1055_v8 = vmax.f32 %v1051_v18, %v2314_v35 }
 0x1d3   : > { %v2316_v36 = vpop.f32.mrf.mxu1 }
 0x1d4   : > { %v1056_v9 = vmax.f32 %v1052_v39, %v2316_v36 }
 0x1d5   : > { %v2318_v37 = vpop.f32.mrf.mxu1 }
 0x1d6   : > { %v1057_v12 = vmax.f32 %v1053_v7, %v2318_v37 }
 0x1d7   : > { %v2320_v38 = vpop.f32.mrf.mxu1 }
 0x1d8   : > { %v1058_v10 = vmax.f32 %v1054_v5, %v2320_v38 }
 0x1d9   : > { %v2322_v40 = vpop.f32.mrf.mxu1 }
 0x1da   : > { %v1059_v13 = vmax.f32 %v1055_v8, %v2322_v40 }
 0x1db   : > { %v2324_v41 = vpop.f32.mrf.mxu1 }
 0x1dc   : > { %v1060_v14 = vmax.f32 %v1056_v9, %v2324_v41 }
 0x1dd   : > { %v2326_v42 = vpop.f32.mrf.mxu1 }
 0x1de   : > { %v1061_v17 = vmax.f32 %v1057_v12, %v2326_v42 }
 0x1df   : > { %v2328_v43 = vpop.f32.mrf.mxu1 }
 0x1e0   : > { %v1062_v15 = vmax.f32 %v1058_v10, %v2328_v43 }
 0x1e1   : > { %v2330_v44 = vpop.f32.mrf.mxu1 }
 0x1e2   : > { %v1063_v18 = vmax.f32 %v1059_v13, %v2330_v44 }
 0x1e3   : > { %v2332_v45 = vpop.f32.mrf.mxu1 }
 0x1e4   : > { %v1064_v39 = vmax.f32 %v1060_v14, %v2332_v45 }
 0x1e5   : > { %v2334_v46 = vpop.f32.mrf.mxu1 }
 0x1e6   : > { %v1065_v7 = vmax.f32 %v1061_v17, %v2334_v46 }
 0x1e7   : > { %v2336_v47 = vpop.f32.mrf.mxu1 }
 0x1e8   : > { %v1066_v5 = vmax.f32 %v1062_v15, %v2336_v47 }
 0x1e9   : > { %v2338_v48 = vpop.f32.mrf.mxu1 }
 0x1ea   : > { %v1067_v8 = vmax.f32 %v1063_v18, %v2338_v48 }
 0x1eb   : > { %v2340_v49 = vpop.f32.mrf.mxu1 }
 0x1ec   : > { %v1068_v9 = vmax.f32 %v1064_v39, %v2340_v49 }
 0x1ed   : > { %v2342_v50 = vpop.f32.mrf.mxu1 }
 0x1ee   : > { %2844 = vst [vmem:[#allocation14_spill] sm:$0xff] %v2342_v50  ;;  %v1069_v12 = vmax.f32 %v1065_v7, %v2342_v50 }
 0x1ef   : > { %v2344_v51 = vpop.f32.mrf.mxu1 }
 0x1f0   : > { %2845 = vst [vmem:[#allocation15_spill] sm:$0xff] %v2344_v51  ;;  %v1070_v10 = vmax.f32 %v1066_v5, %v2344_v51 }
 0x1f1   : > { %v2346_v52 = vpop.f32.mrf.mxu1 }
 0x1f2   : > { %2846 = vst [vmem:[#allocation16_spill] sm:$0xff] %v2346_v52  ;;  %v1071_v13 = vmax.f32 %v1067_v8, %v2346_v52 }
 0x1f3   : > { %v2348_v53 = vpop.f32.mrf.mxu1 }
 0x1f4   : > { %2847 = vst [vmem:[#allocation17_spill] sm:$0xff] %v2348_v53  ;;  %v1072_v14 = vmax.f32 %v1068_v9, %v2348_v53 }
 0x1f5   : > { %v2350_v54 = vpop.f32.mrf.mxu1 }
 0x1f6   : > { %2848 = vst [vmem:[#allocation18_spill] sm:$0xff] %v2350_v54  ;;  %v1073_v17 = vmax.f32 %v1069_v12, %v2350_v54 }
 0x1f7   : > { %v2352_v55 = vpop.f32.mrf.mxu1 }
 0x1f8   : > { %2849 = vst [vmem:[#allocation19_spill] sm:$0xff] %v2352_v55  ;;  %v1074_v15 = vmax.f32 %v1070_v10, %v2352_v55 }
 0x1f9   : > { %v2354_v56 = vpop.f32.mrf.mxu1 }
 0x1fa   : > { %2850 = vst [vmem:[#allocation20_spill] sm:$0xff] %v2354_v56  ;;  %v1075_v18 = vmax.f32 %v1071_v13, %v2354_v56 }
 0x1fb   : > { %v2356_v57 = vpop.f32.mrf.mxu1 }
 0x1fc   : > { %2851 = vst [vmem:[#allocation21_spill] sm:$0xff] %v2356_v57  ;;  %v1076_v39 = vmax.f32 %v1072_v14, %v2356_v57 }
 0x1fd   : > { %v2358_v58 = vpop.f32.mrf.mxu1 }
 0x1fe   : > { %2852 = vst [vmem:[#allocation22_spill] sm:$0xff] %v2358_v58  ;;  %v1077_v7 = vmax.f32 %v1073_v17, %v2358_v58  ;;  %v314_v58 = vpop.xlane.xlu0 %313 }
 0x1ff   : > { %v2360_v59 = vpop.f32.mrf.mxu1 }
 0x200   : > { %2853 = vst [vmem:[#allocation23_spill] sm:$0xff] %v2360_v59  ;;  %v1078_v5 = vmax.f32 %v1074_v15, %v2360_v59 }
 0x201   : > { %v2362_v60 = vpop.f32.mrf.mxu1 }
 0x202   : > { %2854 = vst [vmem:[#allocation24_spill] sm:$0xff] %v2362_v60  ;;  %v1079_v8 = vmax.f32 %v1075_v18, %v2362_v60 }
 0x203   : > { %v2364_v61 = vpop.f32.mrf.mxu1 }
 0x204   : > { %v1080_v9 = vmax.f32 %v1076_v39, %v2364_v61 }
 0x205   : > { %v2366_v62 = vpop.f32.mrf.mxu1 }
 0x206   : > { %v1081_v12 = vmax.f32 %v1077_v7, %v2366_v62 }
 0x207   : > { %v2368_v63 = vpop.f32.mrf.mxu1 }
 0x208   : > { %v1082_v10 = vmax.f32 %v1078_v5, %v2368_v63 }
 0x209   : > { %v2370_v0 = vpop.f32.mrf.mxu1 }
 0x20a   : > { %v1083_v13 = vmax.f32 %v1079_v8, %v2370_v0 }
 0x20b   : > { %v2372_v3 = vpop.f32.mrf.mxu1 }
 0x20c   : > { %v1084_v14 = vmax.f32 %v1080_v9, %v2372_v3 }
 0x20d   : > { %v2374_v4 = vpop.f32.mrf.mxu1 }
 0x20e   : > { %v1085_v17 = vmax.f32 %v1081_v12, %v2374_v4 }
 0x20f   : > { %v2378_v6 = vpop.f32.mrf.mxu1 }
 0x210   : > { %v1086_v15 = vmax.f32 %v1082_v10, %v2378_v6 }
 0x211   : > { %v2387_v11 = vpop.f32.mrf.mxu1 }
 0x212   : > { %v1087_v18 = vmax.f32 %v1083_v13, %v2387_v11 }
 0x213   : > { %v2393_v16 = vpop.f32.mrf.mxu1 }
 0x214   : > { %v1088_v39 = vmax.f32 %v1084_v14, %v2393_v16 }
 0x215   : > { %v2399_v19 = vpop.f32.mrf.mxu1 }
 0x216   : > { %v1089_v7 = vmax.f32 %v1085_v17, %v2399_v19 }
 0x217   : > { %v2405_v20 = vpop.f32.mrf.mxu1 }
 0x218   : > { %v1090_v5 = vmax.f32 %v1086_v15, %v2405_v20 }
 0x219   : > { %v2411_v21 = vpop.f32.mrf.mxu1 }
 0x21a   : > { %v1091_v8 = vmax.f32 %v1087_v18, %v2411_v21 }
 0x21b   : > { %v2417_v22 = vpop.f32.mrf.mxu1 }
 0x21c   : > { %v1092_v9 = vmax.f32 %v1088_v39, %v2417_v22 }
 0x21d   : > { %v2423_v23 = vpop.f32.mrf.mxu1 }
 0x21e   : > { %v1093_v12 = vmax.f32 %v1089_v7, %v2423_v23  ;;  %v315_v7 = vrot.slane %v314_v58, 4 }
 0x21f   : > { %v2429_v2 = vpop.f32.mrf.mxu1 }
 0x220   : > { %v1094_v10 = vmax.f32 %v1090_v5, %v2429_v2 }
 0x221   : > { %v2435_v51 = vpop.f32.mrf.mxu1 }
 0x222   : > { %v1095_v13 = vmax.f32 %v1091_v8, %v2435_v51  ;;  %v316_v8 = vadd.f32 %v315_v7, %v314_v58  ;;  %v1390_v7 = vld [vmem:[%s2816_s6 + $0x10] sm:$0xff] }
 0x223   : > { %v2441_v50 = vpop.f32.mrf.mxu1 }
 0x224   : > { %v1096_v14 = vmax.f32 %v1092_v9, %v2441_v50  ;;  %v317_v59 = vrot.slane %v316_v8, 2 }
 0x225   : > { %v2447_v52 = vpop.f32.mrf.mxu1 }
 0x226   : > { %v1097_v17 = vmax.f32 %v1093_v12, %v2447_v52  ;;  %v318_v9 = vadd.f32 %v317_v59, %v316_v8  ;;  %v323_v12 = vld [vmem:[#allocation4] sm:$0x1]  ;;  %v1405_v8 = vld [vmem:[%s2816_s6 + $0x88] sm:$0xff] }
 0x227   : > { %v2453_v53 = vpop.f32.mrf.mxu1 }
 0x228   : > { %v1098_v15 = vmax.f32 %v1094_v10, %v2453_v53  ;;  %v319_v60 = vrot.slane %v318_v9, 1 }
 0x229   : > { %v2459_v54 = vpop.f32.mrf.mxu1 }
 0x22a   : > { %v1099_v18 = vmax.f32 %v1095_v13, %v2459_v54  ;;  %v1101_v56 = vmax.f32 %v1097_v17, %v1098_v15  ;;  %v320_v10 = vadd.f32 %v319_v60, %v318_v9  ;;  %v1308_v17 = vld [vmem:[%s2815_s5 + $0x8] sm:$0xff] }
 0x22b   : > { %v2465_v55 = vpop.f32.mrf.mxu1  ;;  %1375 = vmatprep.mubr.f32.mxu0 %v1308_v17  ;;  %v1389_v9 = vld [vmem:[%s2816_s6 + $0x8] sm:$0xff] }
 0x22c   : > { %v1100_v39 = vmax.f32 %v1096_v14, %v2465_v55  ;;  %1907 = vpush %v320_v10  ;;  %v1404_v10 = vld [vmem:[%s2816_s6 + $0x80] sm:$0xff] }
 0x22e   : > { %v1102_v5 = vmax.f32 %v1099_v18, %v1100_v39 }
 0x230   : > { %v1103_v57 = vmax.f32 %v1101_v56, %v1102_v5  ;;  %v1983_v5 = vmov 1.0  }
 0x232   : > { %1104 = vmax.xlane.f32.xlu0 %v1103_v57 }
 0x25d   : > { %s1908_s15 = spop %1907 }
 0x25e   : > { %s324_s16 = smul.f32 %s1908_s15, %s2472_s14  ;;  %s1942_s15 = scalar_lea.vmem %s1518_s18, 16 }
 0x25f   : > { %p1943_p12 = scmp.ne.s32.totalorder %s1518_s18, %s1942_s15 }
 0x260   : > { %s325_s17 = smul.f32 0.00390625, %s324_s16  ;;  %s1948_s16 = scalar_lea.vmem %s1518_s18, 32 }
 0x261   : > { %p1944_p13 = pnand %p1943_p12, %p1915_p11  ;;  %p1950_p2 = scmp.lt.s32.totalorder %s1948_s16, %s1942_s15 }
 0x262   : > { %v326_v56 = vstv %s325_s17 }
 0x263   : > { %v327_v13 = vadd.f32 %v326_v56, %v323_v12  ;;  %v1388_v12 = vld [vmem:[%s2816_s6] sm:$0xff]  ;;  %p1945_p0 = pneg %p1944_p13  ;;  %p1951_p3 = por %p1950_p2, %p1949_p1 }
 0x265   : > { %329 = vst.msk [vmem:[#allocation4] sm:$0x1] %vm328_vm3, %v327_v13  ;;  %p1952_p4 = pnand %p1951_p3, %p1945_p0 }
 0x2bb   : > { %v1105_v57 = vpop.xlane.xlu0 %1104 }
 0x2bc   : > { %v1106_v58 = vrot.slane %v1105_v57, 4 }
 0x2be   : > { %v1107_v59 = vmax.f32 %v1105_v57, %v1106_v58 }
 0x2c0   : > { %v1108_v14 = vrot.slane %v1107_v59, 2 }
 0x2c2   : > { %v1109_v60 = vmax.f32 %v1107_v59, %v1108_v14 }
 0x2c4   : > { %v1110_v15 = vrot.slane %v1109_v60, 1 }
 0x2c6   : > { %v1111_v18 = vmax.f32 %v1109_v60, %v1110_v15 }
 0x2c8   : > { %1909 = vpush %v1111_v18 }
 0x2f9   : > { %s1910_s22 = spop %1909 }
 0x2fa   : > { %s1113_s23 = smul.f32 %s1910_s22, %s1040_s21 }
 0x2fc   : > { %v2479_v39 = vstv %s1113_s23 }
 0x2fd   : > { %vm1145_vm4 = vcmp.ge.f32.partialorder %v2338_v48, %v2479_v39  ;;  %vm1146_vm5 = vcmp.ge.f32.partialorder %v2340_v49, %v2479_v39  ;;  %vm1144_vm6 = vcmp.ge.f32.partialorder %v2336_v47, %v2479_v39  ;;  %vm1143_vm7 = vcmp.ge.f32.partialorder %v2334_v46, %v2479_v39  ;;  %v1415_v46 = vld [vmem:[%s2816_s6 + $0xd8] sm:$0xff]  ;;  %v1414_v48 = vld [vmem:[%s2816_s6 + $0xd0] sm:$0xff] }
 0x2fe   : > { %1711 = vmatprep.subr.msk.mxu0 %vm1146_vm5, %v1983_v5  ;;  %vm1142_vm8 = vcmp.ge.f32.partialorder %v2332_v45, %v2479_v39  ;;  %vm1141_vm9 = vcmp.ge.f32.partialorder %v2330_v44, %v2479_v39  ;;  %vm1140_vm10 = vcmp.ge.f32.partialorder %v2328_v43, %v2479_v39  ;;  %vm1139_vm11 = vcmp.ge.f32.partialorder %v2326_v42, %v2479_v39  ;;  %v1417_v42 = vld [vmem:[%s2816_s6 + $0xe8] sm:$0xff]  ;;  %v1416_v44 = vld [vmem:[%s2816_s6 + $0xe0] sm:$0xff]  ;;  %v1399_v47 = vld [vmem:[%s2816_s6 + $0x58] sm:$0xff] }
 0x2ff   : > { %1712 = vmatpush1.msk.msra.mxu0 %vm1145_vm4, %v1983_v5  ;;  %vm1138_vm12 = vcmp.ge.f32.partialorder %v2324_v41, %v2479_v39  ;;  %vm1137_vm13 = vcmp.ge.f32.partialorder %v2322_v40, %v2479_v39  ;;  %vm1136_vm14 = vcmp.ge.f32.partialorder %v2320_v38, %v2479_v39  ;;  %vm1135_vm15 = vcmp.ge.f32.partialorder %v2318_v37, %v2479_v39  ;;  %v1403_v37 = vld [vmem:[%s2816_s6 + $0x78] sm:$0xff]  ;;  %v1418_v38 = vld [vmem:[%s2816_s6 + $0xf0] sm:$0xff]  ;;  %v1401_v43 = vld [vmem:[%s2816_s6 + $0x68] sm:$0xff] }
 0x300   : > { %1713 = vmatprep.subr.msk.mxu0 %vm1144_vm6, %v1983_v5  ;;  %vm1134_vm0 = vcmp.ge.f32.partialorder %v2316_v36, %v2479_v39  ;;  %vm1133_vm1 = vcmp.ge.f32.partialorder %v2314_v35, %v2479_v39  ;;  %vm1132_vm3 = vcmp.ge.f32.partialorder %v2312_v34, %v2479_v39  ;;  %vm1131_vm4 = vcmp.ge.f32.partialorder %v2310_v33, %v2479_v39  ;;  %v1307_v33 = vld [vmem:[%s2815_s5] sm:$0xff]  ;;  %v1419_v34 = vld [vmem:[%s2816_s6 + $0xf8] sm:$0xff]  ;;  %v1402_v40 = vld [vmem:[%s2816_s6 + $0x70] sm:$0xff] }
 0x301   : > { %1714 = vmatpush1.msk.msra.mxu0 %vm1143_vm7, %v1983_v5  ;;  %vm1130_vm5 = vcmp.ge.f32.partialorder %v2308_v32, %v2479_v39  ;;  %vm1129_vm6 = vcmp.ge.f32.partialorder %v2306_v31, %v2479_v39  ;;  %vm1128_vm7 = vcmp.ge.f32.partialorder %v2304_v30, %v2479_v39  ;;  %v2868_v30 = vld [vmem:[#allocation17_spill] sm:$0xff]  ;;  %v2869_v31 = vld [vmem:[#allocation16_spill] sm:$0xff]  ;;  %v2870_v32 = vld [vmem:[#allocation15_spill] sm:$0xff] }
 0x302   : > { %1715 = vmatprep.subr.msk.mxu0 %vm1142_vm8, %v1983_v5  ;;  %vm1127_vm8 = vcmp.ge.f32.partialorder %v2302_v29, %v2479_v39  ;;  %v2867_v29 = vld [vmem:[#allocation18_spill] sm:$0xff]  ;;  %v1400_v45 = vld [vmem:[%s2816_s6 + $0x60] sm:$0xff] }
 0x303   : > { %1716 = vmatpush1.msk.msra.mxu0 %vm1141_vm9, %v1983_v5  ;;  %vm1126_vm9 = vcmp.ge.f32.partialorder %v2300_v28, %v2479_v39  ;;  %v2860_v28 = vld [vmem:[#allocation8_spill] sm:$0xff]  ;;  %v2871_v35 = vld [vmem:[#allocation14_spill] sm:$0xff] }
 0x304   : > { %1717 = vmatprep.subr.msk.mxu0 %vm1140_vm10, %v1983_v5  ;;  %vm1125_vm10 = vcmp.ge.f32.partialorder %v2298_v27, %v2479_v39  ;;  %v2855_v27 = vld [vmem:[#allocation13_spill] sm:$0xff]  ;;  %v1310_v36 = vld [vmem:[%s2815_s5 + $0x18] sm:$0xff] }
 0x305   : > { %1718 = vmatpush1.msk.msra.mxu0 %vm1139_vm11, %v1983_v5  ;;  %vm1124_vm11 = vcmp.ge.f32.partialorder %v2296_v26, %v2479_v39  ;;  %v2856_v26 = vld [vmem:[#allocation12_spill] sm:$0xff]  ;;  %v1309_v41 = vld [vmem:[%s2815_s5 + $0x10] sm:$0xff] }
 0x306   : > { %1719 = vmatprep.subr.msk.mxu0 %vm1138_vm12, %v1983_v5  ;;  %vm1123_vm12 = vcmp.ge.f32.partialorder %v2294_v25, %v2479_v39  ;;  %v2857_v25 = vld [vmem:[#allocation11_spill] sm:$0xff]  ;;  %v1398_v49 = vld [vmem:[%s2816_s6 + $0x50] sm:$0xff] }
 0x307   : > { %1720 = vmatpush1.msk.msra.mxu0 %vm1137_vm13, %v1983_v5  ;;  %vm1122_vm13 = vcmp.ge.f32.partialorder %v2292_v24, %v2479_v39  ;;  %v2858_v24 = vld [vmem:[#allocation10_spill] sm:$0xff] }
 0x308   : > { %1721 = vmatprep.subr.msk.mxu0 %vm1136_vm14, %v1983_v5  ;;  %vm1121_vm14 = vcmp.ge.f32.partialorder %v2290_v1, %v2479_v39  ;;  %v2859_v1 = vld [vmem:[#allocation9_spill] sm:$0xff] }
 0x309   : > { %1722 = vmatpush1.msk.msra.mxu0 %vm1135_vm15, %v1983_v5  ;;  %vm1120_vm15 = vcmp.ge.f32.partialorder %v2855_v27, %v2479_v39 }
 0x30a   : > { %1723 = vmatprep.subr.msk.mxu0 %vm1134_vm0, %v1983_v5  ;;  %vm1119_vm0 = vcmp.ge.f32.partialorder %v2856_v26, %v2479_v39 }
 0x30b   : > { %1724 = vmatpush1.msk.msra.mxu0 %vm1133_vm1, %v1983_v5  ;;  %vm1118_vm1 = vcmp.ge.f32.partialorder %v2857_v25, %v2479_v39 }
 0x30c   : > { %1725 = vmatprep.subr.msk.mxu0 %vm1132_vm3, %v1983_v5  ;;  %vm1117_vm3 = vcmp.ge.f32.partialorder %v2858_v24, %v2479_v39 }
 0x30d   : > { %1726 = vmatpush1.msk.msra.mxu0 %vm1131_vm4, %v1983_v5  ;;  %vm1116_vm4 = vcmp.ge.f32.partialorder %v2859_v1, %v2479_v39 }
 0x30e   : > { %1727 = vmatprep.subr.msk.mxu0 %vm1130_vm5, %v1983_v5  ;;  %vm1115_vm5 = vcmp.ge.f32.partialorder %v2860_v28, %v2479_v39 }
 0x30f   : > { %1728 = vmatpush1.msk.msra.mxu0 %vm1129_vm6, %v1983_v5  ;;  %vm1178_vm6 = vcmp.ge.f32.partialorder %v2465_v55, %v2479_v39  ;;  %v1395_v55 = vld [vmem:[%s2816_s6 + $0x38] sm:$0xff] }
 0x310   : > { %1729 = vmatprep.subr.msk.mxu0 %vm1128_vm7, %v1983_v5  ;;  %vm1177_vm7 = vcmp.ge.f32.partialorder %v2459_v54, %v2479_v39  ;;  %v1411_v54 = vld [vmem:[%s2816_s6 + $0xb8] sm:$0xff] }
 0x311   : > { %1730 = vmatpush1.msk.msra.mxu0 %vm1127_vm8, %v1983_v5  ;;  %vm1176_vm8 = vcmp.ge.f32.partialorder %v2453_v53, %v2479_v39  ;;  %v1396_v53 = vld [vmem:[%s2816_s6 + $0x40] sm:$0xff] }
 0x312   : > { %1731 = vmatprep.subr.msk.mxu0 %vm1126_vm9, %v1983_v5  ;;  %vm1175_vm9 = vcmp.ge.f32.partialorder %v2447_v52, %v2479_v39  ;;  %v1412_v52 = vld [vmem:[%s2816_s6 + $0xc0] sm:$0xff] }
 0x313   : > { %1732 = vmatpush1.msk.msra.mxu0 %vm1125_vm10, %v1983_v5  ;;  %vm1174_vm10 = vcmp.ge.f32.partialorder %v2441_v50, %v2479_v39  ;;  %v1413_v50 = vld [vmem:[%s2816_s6 + $0xc8] sm:$0xff] }
 0x314   : > { %1733 = vmatprep.subr.msk.mxu0 %vm1124_vm11, %v1983_v5  ;;  %vm1173_vm11 = vcmp.ge.f32.partialorder %v2435_v51, %v2479_v39  ;;  %v1397_v51 = vld [vmem:[%s2816_s6 + $0x48] sm:$0xff] }
 0x315   : > { %1734 = vmatpush1.msk.msra.mxu0 %vm1123_vm12, %v1983_v5  ;;  %vm1172_vm12 = vcmp.ge.f32.partialorder %v2429_v2, %v2479_v39  ;;  %v2866_v2 = vld [vmem:[#allocation19_spill] sm:$0xff] }
 0x316   : > { %1735 = vmatprep.subr.msk.mxu0 %vm1122_vm13, %v1983_v5  ;;  %vm1171_vm13 = vcmp.ge.f32.partialorder %v2423_v23, %v2479_v39  ;;  %v2865_v23 = vld [vmem:[#allocation20_spill] sm:$0xff] }
 0x317   : > { %1736 = vmatpush1.msk.msra.mxu0 %vm1121_vm14, %v1983_v5  ;;  %vm1170_vm14 = vcmp.ge.f32.partialorder %v2417_v22, %v2479_v39  ;;  %v2864_v22 = vld [vmem:[#allocation21_spill] sm:$0xff] }
 0x318   : > { %1737 = vmatprep.subr.msk.mxu0 %vm1120_vm15, %v1983_v5  ;;  %vm1169_vm15 = vcmp.ge.f32.partialorder %v2411_v21, %v2479_v39  ;;  %v2863_v21 = vld [vmem:[#allocation22_spill] sm:$0xff] }
 0x319   : > { %1738 = vmatpush1.msk.msra.mxu0 %vm1119_vm0, %v1983_v5  ;;  %vm1168_vm0 = vcmp.ge.f32.partialorder %v2405_v20, %v2479_v39  ;;  %v2862_v20 = vld [vmem:[#allocation23_spill] sm:$0xff] }
 0x31a   : > { %1739 = vmatprep.subr.msk.mxu0 %vm1118_vm1, %v1983_v5  ;;  %vm1167_vm1 = vcmp.ge.f32.partialorder %v2399_v19, %v2479_v39  ;;  %v2861_v19 = vld [vmem:[#allocation24_spill] sm:$0xff] }
 0x31b   : > { %1740 = vmatpush1.msk.msra.mxu0 %vm1117_vm3, %v1983_v5  ;;  %vm1166_vm3 = vcmp.ge.f32.partialorder %v2393_v16, %v2479_v39  ;;  %v1406_v16 = vld [vmem:[%s2816_s6 + $0x90] sm:$0xff] }
 0x31c   : > { %1741 = vmatprep.subr.msk.mxu0 %vm1116_vm4, %v1983_v5  ;;  %vm1165_vm4 = vcmp.ge.f32.partialorder %v2387_v11, %v2479_v39  ;;  %v1391_v11 = vld [vmem:[%s2816_s6 + $0x18] sm:$0xff] }
 0x31d   : > { %1742 = vmatpush1.msk.msra.mxu0 %vm1115_vm5, %v1983_v5  ;;  %vm1164_vm5 = vcmp.ge.f32.partialorder %v2378_v6, %v2479_v39  ;;  %v1407_v6 = vld [vmem:[%s2816_s6 + $0x98] sm:$0xff] }
 0x31e   : > { %1743 = vmatprep.subr.msk.mxu0 %vm1178_vm6, %v1983_v5  ;;  %vm1163_vm6 = vcmp.ge.f32.partialorder %v2374_v4, %v2479_v39  ;;  %v1392_v4 = vld [vmem:[%s2816_s6 + $0x20] sm:$0xff] }
 0x31f   : > { %1744 = vmatpush2.msk.msra.mxu0 %vm1177_vm7, %v1983_v5  ;;  %vm1162_vm7 = vcmp.ge.f32.partialorder %v2372_v3, %v2479_v39  ;;  %v1408_v3 = vld [vmem:[%s2816_s6 + $0xa0] sm:$0xff] }
 0x320   : > { %1745 = vmatprep.subr.msk.mxu0 %vm1176_vm8, %v1983_v5  ;;  %vm1161_vm8 = vcmp.ge.f32.partialorder %v2370_v0, %v2479_v39  ;;  %v1393_v0 = vld [vmem:[%s2816_s6 + $0x28] sm:$0xff] }
 0x321   : > { %1746 = vmatpush2.msk.msra.mxu0 %vm1175_vm9, %v1983_v5  ;;  %vm1160_vm9 = vcmp.ge.f32.partialorder %v2368_v63, %v2479_v39  ;;  %v1409_v63 = vld [vmem:[%s2816_s6 + $0xa8] sm:$0xff] }
 0x322   : > { %1747 = vmatprep.subr.msk.mxu0 %vm1174_vm10, %v1983_v5  ;;  %vm1159_vm10 = vcmp.ge.f32.partialorder %v2366_v62, %v2479_v39  ;;  %v1394_v62 = vld [vmem:[%s2816_s6 + $0x30] sm:$0xff] }
 0x323   : > { %1748 = vmatpush2.msk.msra.mxu0 %vm1173_vm11, %v1983_v5  ;;  %vm1158_vm11 = vcmp.ge.f32.partialorder %v2364_v61, %v2479_v39  ;;  %v1410_v61 = vld [vmem:[%s2816_s6 + $0xb0] sm:$0xff] }
 0x324   : > { %1749 = vmatprep.subr.msk.mxu0 %vm1172_vm12, %v1983_v5  ;;  %vm1157_vm12 = vcmp.ge.f32.partialorder %v2861_v19, %v2479_v39 }
 0x325   : > { %1750 = vmatpush2.msk.msra.mxu0 %vm1171_vm13, %v1983_v5  ;;  %vm1156_vm13 = vcmp.ge.f32.partialorder %v2862_v20, %v2479_v39 }
 0x326   : > { %1751 = vmatprep.subr.msk.mxu0 %vm1170_vm14, %v1983_v5  ;;  %vm1155_vm14 = vcmp.ge.f32.partialorder %v2863_v21, %v2479_v39 }
 0x327   : > { %1752 = vmatpush2.msk.msra.mxu0 %vm1169_vm15, %v1983_v5  ;;  %vm1154_vm15 = vcmp.ge.f32.partialorder %v2864_v22, %v2479_v39 }
 0x328   : > { %1753 = vmatprep.subr.msk.mxu0 %vm1168_vm0, %v1983_v5  ;;  %vm1153_vm0 = vcmp.ge.f32.partialorder %v2865_v23, %v2479_v39 }
 0x329   : > { %1754 = vmatpush2.msk.msra.mxu0 %vm1167_vm1, %v1983_v5  ;;  %vm1152_vm1 = vcmp.ge.f32.partialorder %v2866_v2, %v2479_v39 }
 0x32a   : > { %1755 = vmatprep.subr.msk.mxu0 %vm1166_vm3, %v1983_v5  ;;  %vm1151_vm3 = vcmp.ge.f32.partialorder %v2867_v29, %v2479_v39 }
 0x32b   : > { %1756 = vmatpush2.msk.msra.mxu0 %vm1165_vm4, %v1983_v5  ;;  %vm1150_vm4 = vcmp.ge.f32.partialorder %v2868_v30, %v2479_v39 }
 0x32c   : > { %1757 = vmatprep.subr.msk.mxu0 %vm1164_vm5, %v1983_v5  ;;  %vm1149_vm5 = vcmp.ge.f32.partialorder %v2869_v31, %v2479_v39 }
 0x32d   : > { %1758 = vmatpush2.msk.msra.mxu0 %vm1163_vm6, %v1983_v5  ;;  %vm1148_vm6 = vcmp.ge.f32.partialorder %v2870_v32, %v2479_v39 }
 0x32e   : > { %1759 = vmatprep.subr.msk.mxu0 %vm1162_vm7, %v1983_v5  ;;  %vm1147_vm7 = vcmp.ge.f32.partialorder %v2871_v35, %v2479_v39 }
 0x32f   : > { %1760 = vmatpush2.msk.msra.mxu0 %vm1161_vm8, %v1983_v5 }
 0x330   : > { %1761 = vmatprep.subr.msk.mxu0 %vm1160_vm9, %v1983_v5 }
 0x331   : > { %1762 = vmatpush2.msk.msra.mxu0 %vm1159_vm10, %v1983_v5 }
 0x332   : > { %1763 = vmatprep.subr.msk.mxu0 %vm1158_vm11, %v1983_v5 }
 0x333   : > { %1764 = vmatpush2.msk.msra.mxu0 %vm1157_vm12, %v1983_v5 }
 0x334   : > { %1765 = vmatprep.subr.msk.mxu0 %vm1156_vm13, %v1983_v5 }
 0x335   : > { %1766 = vmatpush2.msk.msra.mxu0 %vm1155_vm14, %v1983_v5 }
 0x336   : > { %1767 = vmatprep.subr.msk.mxu0 %vm1154_vm15, %v1983_v5 }
 0x337   : > { %1768 = vmatpush2.msk.msra.mxu0 %vm1153_vm0, %v1983_v5 }
 0x338   : > { %1769 = vmatprep.subr.msk.mxu0 %vm1152_vm1, %v1983_v5 }
 0x339   : > { %1770 = vmatpush2.msk.msra.mxu0 %vm1151_vm3, %v1983_v5 }
 0x33a   : > { %1771 = vmatprep.subr.msk.mxu0 %vm1150_vm4, %v1983_v5 }
 0x33b   : > { %1772 = vmatpush2.msk.msra.mxu0 %vm1149_vm5, %v1983_v5 }
 0x33c   : > { %1773 = vmatprep.subr.msk.mxu0 %vm1148_vm6, %v1983_v5 }
 0x33d   : > { %1774 = vmatpush2.msk.msra.mxu0 %vm1147_vm7, %v1983_v5 }
 0x33e   : > { %1376 = vmatmul.mubr.f32.vlgmr.msra.gmra.mxu0 %v1307_v33  ;;  %1817 = vmatprep.subr.mxu0 %v1419_v34 }
 0x33f   : > { %1381 = vmatprep.mubr.f32.mxu0 %v1310_v36  ;;  %1818 = vmatpush3.msra.mxu0 %v1403_v37 }
 0x340   : > { %1819 = vmatprep.subr.mxu0 %v1418_v38 }
 0x341   : > { %1820 = vmatpush3.msra.mxu0 %v1402_v40 }
 0x342   : > { %1382 = vmatmul.mubr.f32.gmra.mxu0 %v1309_v41  ;;  %1821 = vmatprep.subr.mxu0 %v1417_v42 }
 0x343   : > { %1822 = vmatpush3.msra.mxu0 %v1401_v43 }
 0x344   : > { %1823 = vmatprep.subr.mxu0 %v1416_v44 }
 0x345   : > { %1824 = vmatpush3.msra.mxu0 %v1400_v45 }
 0x346   : > { %1825 = vmatprep.subr.mxu0 %v1415_v46 }
 0x347   : > { %1826 = vmatpush3.msra.mxu0 %v1399_v47 }
 0x348   : > { %1827 = vmatprep.subr.mxu0 %v1414_v48 }
 0x349   : > { %1828 = vmatpush3.msra.mxu0 %v1398_v49 }
 0x34a   : > { %1829 = vmatprep.subr.mxu0 %v1413_v50 }
 0x34b   : > { %1830 = vmatpush3.msra.mxu0 %v1397_v51 }
 0x34c   : > { %1831 = vmatprep.subr.mxu0 %v1412_v52 }
 0x34d   : > { %1832 = vmatpush3.msra.mxu0 %v1396_v53 }
 0x34e   : > { %1833 = vmatprep.subr.mxu0 %v1411_v54 }
 0x34f   : > { %1834 = vmatpush3.msra.mxu0 %v1395_v55 }
 0x350   : > { %1835 = vmatprep.subr.mxu0 %v1410_v61 }
 0x351   : > { %1836 = vmatpush3.msra.mxu0 %v1394_v62 }
 0x352   : > { %1837 = vmatprep.subr.mxu0 %v1409_v63 }
 0x353   : > { %1838 = vmatpush3.msra.mxu0 %v1393_v0 }
 0x354   : > { %1839 = vmatprep.subr.mxu0 %v1408_v3 }
 0x355   : > { %1840 = vmatpush3.msra.mxu0 %v1392_v4 }
 0x356   : > { %1841 = vmatprep.subr.mxu0 %v1407_v6 }
 0x357   : > { %1842 = vmatpush3.msra.mxu0 %v1391_v11 }
 0x358   : > { %1843 = vmatprep.subr.mxu0 %v1406_v16 }
 0x359   : > { %1844 = vmatpush3.msra.mxu0 %v1390_v7 }
 0x35a   : > { %1845 = vmatprep.subr.mxu0 %v1405_v8 }
 0x35b   : > { %1846 = vmatpush3.msra.mxu0 %v1389_v9 }
 0x35c   : > { %1847 = vmatprep.subr.mxu0 %v1404_v10 }
 0x35d   : > { %1848 = vmatpush3.msra.mxu0 %v1388_v12 }
 0x3fe   : > { %v1377_v56 = vpop.f32.mrf.mxu0 }
 0x400   : > { %v1379_v13 = vpop.f32.mrf.mxu0 }
 0x401   : > { %1484 = vmatprep.mubr.f32.mxu0 %v1379_v13 }
 0x402   : > { %v1383_v57 = vpop.f32.mrf.mxu0  ;;  %1485 = vmatmul.mubr.f32.vlgmr.msra.gmra.mxu0 %v1377_v56 }
 0x404   : > { %v1385_v58 = vpop.f32.mrf.mxu0 }
 0x405   : > { %1489 = vmatprep.mubr.f32.mxu0 %v1385_v58 }
 0x406   : > { %1490 = vmatmul.mubr.f32.gmra.mxu0 %v1383_v57 }
 0x407   : > { %1955 = shalt.err (!%p1952_p4)
}
 0x408   : > { %1912 = dma.vmem_to_hbm [thread:$0]  (%p1915_p11), %s1518_s18, 16, %s2817_s7, [#allocation5]   ;;  %v1503_v15 = vstv %s2472_s14  ;;  %v2872_v18 = vmov 0.0   ;;  %v1501_v5 = vld [vmem:[%s2818_s8] sm:$0xff]  ;;  %v1502_v28 = vld [vmem:[%s2818_s8 + $0x8] sm:$0xff] }
 0x4c2   : > { %v1849_v59 = vpop.f32.mrf.mxu0 }
 0x4c4   : > { %v1850_v14 = vpop.f32.mrf.mxu0 }
 0x4c5   : > { %v1851_v60 = vadd.f32 %v1850_v14, %v1849_v59 }
 0x4c6   : > { %v1852_v17 = vpop.f32.mrf.mxu0 }
 0x4c7   : > { %vm1495_vm8 = vcmp.gt.f32.partialorder %v1851_v60, 0.0 }
 0x4c8   : > { %v1775_v39 = vsel %vm1495_vm8, 1.0, %v2872_v18  ;;  %v1853_v27 = vpop.f32.mrf.mxu0 }
 0x4c9   : > { %v1504_v26 = vmul.f32 %v1775_v39, %v1503_v15  ;;  %v1854_v25 = vadd.f32 %v1853_v27, %v1852_v17 }
 0x4cb   : > { %v1506_v24 = vadd.f32 %v1504_v26, %v1501_v5  ;;  %vm1496_vm9 = vcmp.gt.f32.partialorder %v1854_v25, 0.0 }
 0x4cc   : > { %v1776_v1 = vsel %vm1496_vm9, 1.0, %v2872_v18 }
 0x4cd   : > { %1508 = vst.msk [vmem:[%s2818_s8] sm:$0xff] %vm309_vm2, %v1506_v24  ;;  %v1505_v19 = vmul.f32 %v1776_v1, %v1503_v15 }
 0x4cf   : > { %v1507_v20 = vadd.f32 %v1505_v19, %v1502_v28 }
 0x4d1   : > { %1509 = vst.msk [vmem:[%s2818_s8 + $0x8] sm:$0xff] %vm309_vm2, %v1507_v20 }
 0x4d2   : > { %1973 = dma.done.wait (%p1915_p11), [#allocation5], 16  }
 0x4d3   : > { %1975 = vsyncadd (%p1915_p11), [#allocation5], 4294967280 }
 0x4d4 PF: > { %s26_s10 = sadd.s32 1, %s1978_s10  }
 0x4d5   : > { %p23_p5 = scmp.ge.s32.totalorder %s26_s10, 8  }
 0x4d7   :  { %25 = sbr.rel (!%p23_p5) target bundleno = 16 (0x10), region = 86 }
 0x4dc   :  { %1536 = vsyncpa [#allocation5], 1 }
 0x4dd   :  { %1538 = vsyncpa [#allocation5 + $0x1], 1 }

// kernel: attn_loss_forward.3
= control target key start
LH: loop header
LB: loop body
LE: loop exit
PB: predicated region body
PF: predicated region fallthrough
CT: control target
= control target key end

     0   :  { %8 = vsyncpa [#allocation3], 0  ;;  %vm21_vm0 = vcmask 0   ;;  %v416_v0 = vmov 0.0   ;;  %vm368_vm1 = vcmask 1040384   ;;  %s417_s25 = smov [#allocation2]   ;;  %s830_s0 = inlined_call_operand.vmem [shape: f32[256,256], index: 0, kind: input, shape index: {}]   ;;  %s831_s1 = inlined_call_operand.vmem [shape: f32[256,256], index: 1, kind: input, shape index: {}]   ;;  %s832_s2 = inlined_call_operand.vmem [shape: f32[1,256], index: 2, kind: input, shape index: {}]   ;;  %s833_s3 = inlined_call_operand.hbm [shape: f32[1,1], index: 3, kind: output, shape index: {}]  }
   0x1   :  { %22 = vst.msk [vmem:[#allocation2] sm:$0x1] %vm21_vm0, %v416_v0  ;;  %v23_v1 = vld [vmem:[%s830_s0] sm:$0xff]  ;;  %v24_v2 = vld [vmem:[%s830_s0 + $0x8] sm:$0xff]  ;;  %v25_v3 = vld [vmem:[%s830_s0 + $0x10] sm:$0xff]  ;;  %s384_s26 = sshll.u32 %s417_s25, 4  ;;  %s385_s26 = int_to_ptr.vmem [resolvable:$true] %s384_s26 }
   0x2   :  { %v26_v4 = vld [vmem:[%s830_s0 + $0x18] sm:$0xff]  ;;  %v87_v5 = vld [vmem:[%s831_s1] sm:$0xff]  ;;  %v88_v6 = vld [vmem:[%s831_s1 + $0x8] sm:$0xff]  ;;  %s398_s27 = scalar_lea.vmem %s385_s26, 32  ;;  %p399_p1 = scmp.lt.s32.totalorder %s385_s26, %s385_s26 }
   0x3   :  { %v89_v7 = vld [vmem:[%s831_s1 + $0x10] sm:$0xff]  ;;  %v90_v8 = vld [vmem:[%s831_s1 + $0x18] sm:$0xff]  ;;  %v27_v9 = vld [vmem:[%s830_s0 + $0x20] sm:$0xff]  ;;  %v151_v13 = vsub.f32 %v23_v1, %v87_v5  ;;  %v152_v16 = vsub.f32 %v24_v2, %v88_v6 }
   0x4   :  { %v28_v10 = vld [vmem:[%s830_s0 + $0x28] sm:$0xff]  ;;  %v91_v11 = vld [vmem:[%s831_s1 + $0x20] sm:$0xff]  ;;  %v29_v14 = vld [vmem:[%s830_s0 + $0x30] sm:$0xff]  ;;  %v153_v17 = vsub.f32 %v25_v3, %v89_v7  ;;  %v154_v18 = vsub.f32 %v26_v4, %v90_v8 }
   0x5   :  { %v92_v12 = vld [vmem:[%s831_s1 + $0x28] sm:$0xff]  ;;  %v93_v15 = vld [vmem:[%s831_s1 + $0x30] sm:$0xff]  ;;  %v30_v19 = vld [vmem:[%s830_s0 + $0x38] sm:$0xff]  ;;  %v155_v23 = vsub.f32 %v27_v9, %v91_v11  ;;  %v215_v29 = vmul.f32 %v151_v13, %v151_v13  ;;  %v216_v34 = vmul.f32 %v152_v16, %v152_v16 }
   0x6   :  { %v94_v20 = vld [vmem:[%s831_s1 + $0x38] sm:$0xff]  ;;  %v31_v21 = vld [vmem:[%s830_s0 + $0x40] sm:$0xff]  ;;  %v32_v22 = vld [vmem:[%s830_s0 + $0x48] sm:$0xff]  ;;  %v156_v24 = vsub.f32 %v28_v10, %v92_v12  ;;  %v157_v28 = vsub.f32 %v29_v14, %v93_v15  ;;  %v217_v35 = vmul.f32 %v153_v17, %v153_v17  ;;  %v218_v36 = vmul.f32 %v154_v18, %v154_v18 }
   0x7   :  { %v33_v25 = vld [vmem:[%s830_s0 + $0x50] sm:$0xff]  ;;  %v95_v26 = vld [vmem:[%s831_s1 + $0x40] sm:$0xff]  ;;  %v96_v27 = vld [vmem:[%s831_s1 + $0x48] sm:$0xff]  ;;  %v158_v33 = vsub.f32 %v30_v19, %v94_v20  ;;  %v219_v43 = vmul.f32 %v155_v23, %v155_v23 }
   0x8   :  { %v34_v30 = vld [vmem:[%s830_s0 + $0x58] sm:$0xff]  ;;  %v97_v31 = vld [vmem:[%s831_s1 + $0x50] sm:$0xff]  ;;  %v35_v37 = vld [vmem:[%s830_s0 + $0x60] sm:$0xff]  ;;  %v159_v41 = vsub.f32 %v31_v21, %v95_v26  ;;  %v160_v42 = vsub.f32 %v32_v22, %v96_v27  ;;  %v220_v44 = vmul.f32 %v156_v24, %v156_v24  ;;  %v221_v51 = vmul.f32 %v157_v28, %v157_v28 }
   0x9   :  { %v98_v32 = vld [vmem:[%s831_s1 + $0x58] sm:$0xff]  ;;  %v36_v38 = vld [vmem:[%s830_s0 + $0x68] sm:$0xff]  ;;  %v99_v39 = vld [vmem:[%s831_s1 + $0x60] sm:$0xff]  ;;  %v161_v46 = vsub.f32 %v33_v25, %v97_v31  ;;  %v222_v52 = vmul.f32 %v158_v33, %v158_v33  ;;  %v279_v53 = vadd.f32 %v217_v35, %v215_v29  ;;  %v316_v54 = vadd.f32 %v218_v36, %v216_v34 }
   0xa   :  { %v100_v40 = vld [vmem:[%s831_s1 + $0x68] sm:$0xff]  ;;  %v37_v45 = vld [vmem:[%s830_s0 + $0x70] sm:$0xff]  ;;  %v162_v47 = vsub.f32 %v34_v30, %v98_v32  ;;  %v38_v48 = vld [vmem:[%s830_s0 + $0x78] sm:$0xff]  ;;  %v163_v56 = vsub.f32 %v35_v37, %v99_v39  ;;  %v223_v61 = vmul.f32 %v159_v41, %v159_v41  ;;  %v224_v62 = vmul.f32 %v160_v42, %v160_v42 }
   0xb   :  { %v101_v49 = vld [vmem:[%s831_s1 + $0x70] sm:$0xff]  ;;  %v102_v50 = vld [vmem:[%s831_s1 + $0x78] sm:$0xff]  ;;  %v39_v55 = vld [vmem:[%s830_s0 + $0x80] sm:$0xff]  ;;  %v164_v57 = vsub.f32 %v36_v38, %v100_v40  ;;  %v280_v63 = vadd.f32 %v279_v53, %v219_v43  ;;  %v317_v0 = vadd.f32 %v316_v54, %v220_v44  ;;  %v225_v7 = vmul.f32 %v161_v46, %v161_v46 }
   0xc   :  { %v40_v58 = vld [vmem:[%s830_s0 + $0x88] sm:$0xff]  ;;  %v103_v59 = vld [vmem:[%s831_s1 + $0x80] sm:$0xff]  ;;  %v41_v1 = vld [vmem:[%s830_s0 + $0x90] sm:$0xff]  ;;  %v165_v2 = vsub.f32 %v37_v45, %v101_v49  ;;  %v166_v3 = vsub.f32 %v38_v48, %v102_v50  ;;  %v226_v8 = vmul.f32 %v162_v47, %v162_v47  ;;  %v227_v17 = vmul.f32 %v163_v56, %v163_v56 }
   0xd   :  { %v104_v60 = vld [vmem:[%s831_s1 + $0x88] sm:$0xff]  ;;  %v42_v4 = vld [vmem:[%s830_s0 + $0x98] sm:$0xff]  ;;  %v105_v5 = vld [vmem:[%s831_s1 + $0x90] sm:$0xff]  ;;  %v281_v9 = vadd.f32 %v280_v63, %v221_v51  ;;  %v318_v10 = vadd.f32 %v317_v0, %v222_v52  ;;  %v167_v12 = vsub.f32 %v39_v55, %v103_v59  ;;  %v228_v18 = vmul.f32 %v164_v57, %v164_v57 }
   0xe   :  { %v106_v6 = vld [vmem:[%s831_s1 + $0x98] sm:$0xff]  ;;  %v43_v11 = vld [vmem:[%s830_s0 + $0xa0] sm:$0xff]  ;;  %v168_v13 = vsub.f32 %v40_v58, %v104_v60  ;;  %v44_v14 = vld [vmem:[%s830_s0 + $0xa8] sm:$0xff]  ;;  %v169_v22 = vsub.f32 %v41_v1, %v105_v5  ;;  %v229_v27 = vmul.f32 %v165_v2, %v165_v2  ;;  %v230_v28 = vmul.f32 %v166_v3, %v166_v3 }
   0xf   :  { %v107_v15 = vld [vmem:[%s831_s1 + $0xa0] sm:$0xff]  ;;  %v108_v16 = vld [vmem:[%s831_s1 + $0xa8] sm:$0xff]  ;;  %v282_v19 = vadd.f32 %v281_v9, %v223_v61  ;;  %v319_v20 = vadd.f32 %v318_v10, %v224_v62  ;;  %v45_v21 = vld [vmem:[%s830_s0 + $0xb0] sm:$0xff]  ;;  %v170_v23 = vsub.f32 %v42_v4, %v106_v6  ;;  %v231_v37 = vmul.f32 %v167_v12, %v167_v12 }
  0x10   :  { %v46_v24 = vld [vmem:[%s830_s0 + $0xb8] sm:$0xff]  ;;  %v109_v25 = vld [vmem:[%s831_s1 + $0xb0] sm:$0xff]  ;;  %v47_v31 = vld [vmem:[%s830_s0 + $0xc0] sm:$0xff]  ;;  %v171_v32 = vsub.f32 %v43_v11, %v107_v15  ;;  %v172_v33 = vsub.f32 %v44_v14, %v108_v16  ;;  %v232_v38 = vmul.f32 %v168_v13, %v168_v13  ;;  %v233_v47 = vmul.f32 %v169_v22, %v169_v22 }
  0x11   :  { %v110_v26 = vld [vmem:[%s831_s1 + $0xb8] sm:$0xff]  ;;  %v283_v29 = vadd.f32 %v282_v19, %v225_v7  ;;  %v320_v30 = vadd.f32 %v319_v20, %v226_v8  ;;  %v48_v34 = vld [vmem:[%s830_s0 + $0xc8] sm:$0xff]  ;;  %v111_v35 = vld [vmem:[%s831_s1 + $0xc0] sm:$0xff]  ;;  %v173_v42 = vsub.f32 %v45_v21, %v109_v25  ;;  %v234_v48 = vmul.f32 %v170_v23, %v170_v23 }
  0x12   :  { %v112_v36 = vld [vmem:[%s831_s1 + $0xc8] sm:$0xff]  ;;  %v49_v41 = vld [vmem:[%s830_s0 + $0xd0] sm:$0xff]  ;;  %v174_v43 = vsub.f32 %v46_v24, %v110_v26  ;;  %v50_v44 = vld [vmem:[%s830_s0 + $0xd8] sm:$0xff]  ;;  %v175_v52 = vsub.f32 %v47_v31, %v111_v35  ;;  %v235_v57 = vmul.f32 %v171_v32, %v171_v32  ;;  %v236_v58 = vmul.f32 %v172_v33, %v172_v33 }
  0x13   :  { %v284_v39 = vadd.f32 %v283_v29, %v227_v17  ;;  %v321_v40 = vadd.f32 %v320_v30, %v228_v18  ;;  %v113_v45 = vld [vmem:[%s831_s1 + $0xd0] sm:$0xff]  ;;  %v114_v46 = vld [vmem:[%s831_s1 + $0xd8] sm:$0xff]  ;;  %v51_v51 = vld [vmem:[%s830_s0 + $0xe0] sm:$0xff]  ;;  %v176_v53 = vsub.f32 %v48_v34, %v112_v36  ;;  %v237_v3 = vmul.f32 %v173_v42, %v173_v42 }
  0x14   :  { %v52_v54 = vld [vmem:[%s830_s0 + $0xe8] sm:$0xff]  ;;  %v115_v55 = vld [vmem:[%s831_s1 + $0xe0] sm:$0xff]  ;;  %v53_v61 = vld [vmem:[%s830_s0 + $0xf0] sm:$0xff]  ;;  %v177_v62 = vsub.f32 %v49_v41, %v113_v45  ;;  %v178_v63 = vsub.f32 %v50_v44, %v114_v46  ;;  %v238_v4 = vmul.f32 %v174_v43, %v174_v43  ;;  %v239_v13 = vmul.f32 %v175_v52, %v175_v52 }
  0x15   :  { %v285_v49 = vadd.f32 %v284_v39, %v229_v27  ;;  %v322_v50 = vadd.f32 %v321_v40, %v230_v28  ;;  %v116_v56 = vld [vmem:[%s831_s1 + $0xe8] sm:$0xff]  ;;  %v54_v0 = vld [vmem:[%s830_s0 + $0xf8] sm:$0xff]  ;;  %v117_v1 = vld [vmem:[%s831_s1 + $0xf0] sm:$0xff]  ;;  %v179_v8 = vsub.f32 %v51_v51, %v115_v55  ;;  %v240_v14 = vmul.f32 %v176_v53, %v176_v53 }
  0x16   :  { %v118_v2 = vld [vmem:[%s831_s1 + $0xf8] sm:$0xff]  ;;  %v55_v7 = vld [vmem:[%s830_s0 + $0x100] sm:$0xff]  ;;  %v180_v9 = vsub.f32 %v52_v54, %v116_v56  ;;  %v56_v10 = vld [vmem:[%s830_s0 + $0x108] sm:$0xff]  ;;  %v181_v18 = vsub.f32 %v53_v61, %v117_v1  ;;  %v241_v23 = vmul.f32 %v177_v62, %v177_v62  ;;  %v242_v24 = vmul.f32 %v178_v63, %v178_v63 }
  0x17   :  { %v286_v59 = vadd.f32 %v285_v49, %v231_v37  ;;  %v323_v60 = vadd.f32 %v322_v50, %v232_v38  ;;  %v119_v11 = vld [vmem:[%s831_s1 + $0x100] sm:$0xff]  ;;  %v120_v12 = vld [vmem:[%s831_s1 + $0x108] sm:$0xff]  ;;  %v57_v17 = vld [vmem:[%s830_s0 + $0x110] sm:$0xff]  ;;  %v182_v19 = vsub.f32 %v54_v0, %v118_v2  ;;  %v243_v33 = vmul.f32 %v179_v8, %v179_v8 }
  0x18   :  { %v58_v20 = vld [vmem:[%s830_s0 + $0x118] sm:$0xff]  ;;  %v121_v21 = vld [vmem:[%s831_s1 + $0x110] sm:$0xff]  ;;  %v59_v27 = vld [vmem:[%s830_s0 + $0x120] sm:$0xff]  ;;  %v183_v28 = vsub.f32 %v55_v7, %v119_v11  ;;  %v184_v29 = vsub.f32 %v56_v10, %v120_v12  ;;  %v244_v34 = vmul.f32 %v180_v9, %v180_v9  ;;  %v245_v43 = vmul.f32 %v181_v18, %v181_v18 }
  0x19   :  { %v287_v5 = vadd.f32 %v286_v59, %v233_v47  ;;  %v324_v6 = vadd.f32 %v323_v60, %v234_v48  ;;  %v122_v22 = vld [vmem:[%s831_s1 + $0x118] sm:$0xff]  ;;  %v60_v30 = vld [vmem:[%s830_s0 + $0x128] sm:$0xff]  ;;  %v123_v31 = vld [vmem:[%s831_s1 + $0x120] sm:$0xff]  ;;  %v185_v38 = vsub.f32 %v57_v17, %v121_v21  ;;  %v246_v44 = vmul.f32 %v182_v19, %v182_v19 }
  0x1a   :  { %v124_v32 = vld [vmem:[%s831_s1 + $0x128] sm:$0xff]  ;;  %v61_v37 = vld [vmem:[%s830_s0 + $0x130] sm:$0xff]  ;;  %v186_v39 = vsub.f32 %v58_v20, %v122_v22  ;;  %v62_v40 = vld [vmem:[%s830_s0 + $0x138] sm:$0xff]  ;;  %v187_v48 = vsub.f32 %v59_v27, %v123_v31  ;;  %v247_v53 = vmul.f32 %v183_v28, %v183_v28  ;;  %v248_v54 = vmul.f32 %v184_v29, %v184_v29 }
  0x1b   :  { %v288_v15 = vadd.f32 %v287_v5, %v235_v57  ;;  %v325_v16 = vadd.f32 %v324_v6, %v236_v58  ;;  %v125_v41 = vld [vmem:[%s831_s1 + $0x130] sm:$0xff]  ;;  %v126_v42 = vld [vmem:[%s831_s1 + $0x138] sm:$0xff]  ;;  %v63_v47 = vld [vmem:[%s830_s0 + $0x140] sm:$0xff]  ;;  %v188_v49 = vsub.f32 %v60_v30, %v124_v32  ;;  %v249_v63 = vmul.f32 %v185_v38, %v185_v38 }
  0x1c   :  { %v64_v50 = vld [vmem:[%s830_s0 + $0x148] sm:$0xff]  ;;  %v127_v51 = vld [vmem:[%s831_s1 + $0x140] sm:$0xff]  ;;  %v65_v57 = vld [vmem:[%s830_s0 + $0x150] sm:$0xff]  ;;  %v189_v58 = vsub.f32 %v61_v37, %v125_v41  ;;  %v190_v59 = vsub.f32 %v62_v40, %v126_v42  ;;  %v250_v0 = vmul.f32 %v186_v39, %v186_v39  ;;  %v251_v9 = vmul.f32 %v187_v48, %v187_v48 }
  0x1d   :  { %v289_v25 = vadd.f32 %v288_v15, %v237_v3  ;;  %v326_v26 = vadd.f32 %v325_v16, %v238_v4  ;;  %v128_v52 = vld [vmem:[%s831_s1 + $0x148] sm:$0xff]  ;;  %v66_v60 = vld [vmem:[%s830_s0 + $0x158] sm:$0xff]  ;;  %v129_v61 = vld [vmem:[%s831_s1 + $0x150] sm:$0xff]  ;;  %v191_v4 = vsub.f32 %v63_v47, %v127_v51  ;;  %v252_v10 = vmul.f32 %v188_v49, %v188_v49 }
  0x1e   :  { %v130_v62 = vld [vmem:[%s831_s1 + $0x158] sm:$0xff]  ;;  %v67_v3 = vld [vmem:[%s830_s0 + $0x160] sm:$0xff]  ;;  %v192_v5 = vsub.f32 %v64_v50, %v128_v52  ;;  %v68_v6 = vld [vmem:[%s830_s0 + $0x168] sm:$0xff]  ;;  %v253_v19 = vmul.f32 %v189_v58, %v189_v58  ;;  %v254_v20 = vmul.f32 %v190_v59, %v190_v59 }
  0x1f   :  { %v290_v35 = vadd.f32 %v289_v25, %v239_v13  ;;  %v327_v36 = vadd.f32 %v326_v26, %v240_v14  ;;  %v131_v7 = vld [vmem:[%s831_s1 + $0x160] sm:$0xff]  ;;  %v132_v8 = vld [vmem:[%s831_s1 + $0x168] sm:$0xff]  ;;  %v69_v13 = vld [vmem:[%s830_s0 + $0x170] sm:$0xff]  ;;  %v193_v14 = vsub.f32 %v65_v57, %v129_v61  ;;  %v194_v15 = vsub.f32 %v66_v60, %v130_v62 }
  0x20   :  { %v70_v16 = vld [vmem:[%s830_s0 + $0x178] sm:$0xff]  ;;  %v133_v17 = vld [vmem:[%s831_s1 + $0x170] sm:$0xff]  ;;  %v196_v25 = vsub.f32 %v68_v6, %v132_v8  ;;  %v72_v26 = vld [vmem:[%s830_s0 + $0x188] sm:$0xff]  ;;  %v255_v29 = vmul.f32 %v191_v4, %v191_v4  ;;  %v256_v30 = vmul.f32 %v192_v5, %v192_v5 }
  0x21   :  { %v291_v45 = vadd.f32 %v290_v35, %v241_v23  ;;  %v328_v46 = vadd.f32 %v327_v36, %v242_v24  ;;  %v134_v18 = vld [vmem:[%s831_s1 + $0x178] sm:$0xff]  ;;  %v71_v23 = vld [vmem:[%s830_s0 + $0x180] sm:$0xff]  ;;  %v195_v24 = vsub.f32 %v67_v3, %v131_v7  ;;  %v136_v28 = vld [vmem:[%s831_s1 + $0x188] sm:$0xff]  ;;  %v257_v39 = vmul.f32 %v193_v14, %v193_v14 }
  0x22   :  { %v135_v27 = vld [vmem:[%s831_s1 + $0x180] sm:$0xff]  ;;  %v198_v35 = vsub.f32 %v70_v16, %v134_v18  ;;  %v74_v36 = vld [vmem:[%s830_s0 + $0x198] sm:$0xff]  ;;  %v137_v37 = vld [vmem:[%s831_s1 + $0x190] sm:$0xff]  ;;  %v258_v40 = vmul.f32 %v194_v15, %v194_v15  ;;  %v260_v50 = vmul.f32 %v196_v25, %v196_v25 }
  0x23   :  { %v292_v55 = vadd.f32 %v291_v45, %v243_v33  ;;  %v329_v56 = vadd.f32 %v328_v46, %v244_v34  ;;  %v73_v33 = vld [vmem:[%s830_s0 + $0x190] sm:$0xff]  ;;  %v197_v34 = vsub.f32 %v69_v13, %v133_v17  ;;  %v138_v38 = vld [vmem:[%s831_s1 + $0x198] sm:$0xff]  ;;  %v200_v45 = vsub.f32 %v72_v26, %v136_v28  ;;  %v76_v46 = vld [vmem:[%s830_s0 + $0x1a8] sm:$0xff] }
  0x24   :  { %v139_v47 = vld [vmem:[%s831_s1 + $0x1a0] sm:$0xff]  ;;  %v140_v48 = vld [vmem:[%s831_s1 + $0x1a8] sm:$0xff]  ;;  %v259_v49 = vmul.f32 %v195_v24, %v195_v24  ;;  %v141_v57 = vld [vmem:[%s831_s1 + $0x1b0] sm:$0xff]  ;;  %v262_v60 = vmul.f32 %v198_v35, %v198_v35 }
  0x25   :  { %v293_v1 = vadd.f32 %v292_v55, %v245_v43  ;;  %v330_v2 = vadd.f32 %v329_v56, %v246_v44  ;;  %v75_v43 = vld [vmem:[%s830_s0 + $0x1a0] sm:$0xff]  ;;  %v199_v44 = vsub.f32 %v71_v23, %v135_v27  ;;  %v202_v55 = vsub.f32 %v74_v36, %v138_v38  ;;  %v78_v56 = vld [vmem:[%s830_s0 + $0x1b8] sm:$0xff]  ;;  %v144_v4 = vld [vmem:[%s831_s1 + $0x1c8] sm:$0xff] }
  0x26   :  { %v142_v58 = vld [vmem:[%s831_s1 + $0x1b8] sm:$0xff]  ;;  %v261_v59 = vmul.f32 %v197_v34, %v197_v34  ;;  %v143_v3 = vld [vmem:[%s831_s1 + $0x1c0] sm:$0xff]  ;;  %v264_v6 = vmul.f32 %v200_v45, %v200_v45  ;;  %v145_v13 = vld [vmem:[%s831_s1 + $0x1d0] sm:$0xff] }
  0x27   :  { %v294_v11 = vadd.f32 %v293_v1, %v247_v53  ;;  %v331_v12 = vadd.f32 %v330_v2, %v248_v54  ;;  %v77_v53 = vld [vmem:[%s830_s0 + $0x1b0] sm:$0xff]  ;;  %v201_v54 = vsub.f32 %v73_v33, %v137_v37  ;;  %v204_v1 = vsub.f32 %v76_v46, %v140_v48  ;;  %v80_v2 = vld [vmem:[%s830_s0 + $0x1c8] sm:$0xff]  ;;  %v146_v14 = vld [vmem:[%s831_s1 + $0x1d8] sm:$0xff] }
  0x28   :  { %v263_v5 = vmul.f32 %v199_v44, %v199_v44  ;;  %v266_v16 = vmul.f32 %v202_v55, %v202_v55  ;;  %v147_v23 = vld [vmem:[%s831_s1 + $0x1e0] sm:$0xff]  ;;  %v148_v24 = vld [vmem:[%s831_s1 + $0x1e8] sm:$0xff]  ;;  %v149_v33 = vld [vmem:[%s831_s1 + $0x1f0] sm:$0xff] }
  0x29   :  { %v295_v21 = vadd.f32 %v294_v11, %v249_v63  ;;  %v332_v22 = vadd.f32 %v331_v12, %v250_v0  ;;  %v79_v63 = vld [vmem:[%s830_s0 + $0x1c0] sm:$0xff]  ;;  %v203_v0 = vsub.f32 %v75_v43, %v139_v47  ;;  %v206_v11 = vsub.f32 %v78_v56, %v142_v58  ;;  %v82_v12 = vld [vmem:[%s830_s0 + $0x1d8] sm:$0xff] }
  0x2a   :  { %v265_v15 = vmul.f32 %v201_v54, %v201_v54  ;;  %v268_v26 = vmul.f32 %v204_v1, %v204_v1  ;;  %v150_v34 = vld [vmem:[%s831_s1 + $0x1f8] sm:$0xff] }
  0x2b   :  { %v296_v31 = vadd.f32 %v295_v21, %v251_v9  ;;  %v333_v32 = vadd.f32 %v332_v22, %v252_v10  ;;  %v81_v9 = vld [vmem:[%s830_s0 + $0x1d0] sm:$0xff]  ;;  %v205_v10 = vsub.f32 %v77_v53, %v141_v57  ;;  %v208_v21 = vsub.f32 %v80_v2, %v144_v4  ;;  %v84_v22 = vld [vmem:[%s830_s0 + $0x1e8] sm:$0xff] }
  0x2c   :  { %v267_v25 = vmul.f32 %v203_v0, %v203_v0  ;;  %v270_v36 = vmul.f32 %v206_v11, %v206_v11 }
  0x2d   :  { %v297_v41 = vadd.f32 %v296_v31, %v253_v19  ;;  %v334_v42 = vadd.f32 %v333_v32, %v254_v20  ;;  %v83_v19 = vld [vmem:[%s830_s0 + $0x1e0] sm:$0xff]  ;;  %v207_v20 = vsub.f32 %v79_v63, %v143_v3  ;;  %v210_v31 = vsub.f32 %v82_v12, %v146_v14  ;;  %v86_v32 = vld [vmem:[%s830_s0 + $0x1f8] sm:$0xff] }
  0x2e   :  { %v269_v35 = vmul.f32 %v205_v10, %v205_v10  ;;  %v214_v46 = vsub.f32 %v86_v32, %v150_v34 }
  0x2f   :  { %v298_v51 = vadd.f32 %v297_v41, %v255_v29  ;;  %v335_v52 = vadd.f32 %v334_v42, %v256_v30  ;;  %v85_v29 = vld [vmem:[%s830_s0 + $0x1f0] sm:$0xff]  ;;  %v209_v30 = vsub.f32 %v81_v9, %v145_v13  ;;  %v271_v41 = vmul.f32 %v207_v20, %v207_v20  ;;  %v354_v9 = vld [vmem:[%s832_s2] sm:$0x3]  ;;  %s394_s2 = scalar_lea.vmem %s385_s26, 16 }
  0x30   :  { %v272_v42 = vmul.f32 %v208_v21, %v208_v21  ;;  %v213_v45 = vsub.f32 %v85_v29, %v149_v33  ;;  %v274_v48 = vmul.f32 %v210_v31, %v210_v31  ;;  %v278_v56 = vmul.f32 %v214_v46, %v214_v46  ;;  %p395_p0 = scmp.ne.s32.totalorder %s385_s26, %s394_s2  ;;  %p400_p2 = scmp.lt.s32.totalorder %s398_s27, %s394_s2 }
  0x31   :  { %v299_v61 = vadd.f32 %v298_v51, %v257_v39  ;;  %v336_v62 = vadd.f32 %v335_v52, %v258_v40  ;;  %v211_v39 = vsub.f32 %v83_v19, %v147_v23  ;;  %v212_v40 = vsub.f32 %v84_v22, %v148_v24  ;;  %v353_v23 = vld [vmem:[#allocation2] sm:$0x1] }
  0x32   :  { %v273_v47 = vmul.f32 %v209_v30, %v209_v30  ;;  %v277_v55 = vmul.f32 %v213_v45, %v213_v45  ;;  %p401_p3 = por %p400_p2, %p399_p1 }
  0x33   :  { %v300_v7 = vadd.f32 %v299_v61, %v259_v49  ;;  %v337_v8 = vadd.f32 %v336_v62, %v260_v50  ;;  %v275_v51 = vmul.f32 %v211_v39, %v211_v39  ;;  %v276_v52 = vmul.f32 %v212_v40, %v212_v40 }
  0x34   :  { %v356_v61 = vlaneseq  ;;  %p402_p4 = pnand %p401_p3, %p395_p0 }
  0x35   :  { %v301_v17 = vadd.f32 %v300_v7, %v261_v59  ;;  %v338_v18 = vadd.f32 %v337_v8, %v262_v60 }
  0x36   :  { %v357_v2 = vshrl.u32 %v356_v61, 7 }
  0x37   :  { %v302_v27 = vadd.f32 %v301_v17, %v263_v5  ;;  %v339_v28 = vadd.f32 %v338_v18, %v264_v6 }
  0x38   :  { %v358_v7 = vsub.s32 0, %v357_v2  ;;  %v362_v8 = vsub.s32 1, %v357_v2 }
  0x39   :  { %v303_v37 = vadd.f32 %v302_v27, %v265_v15  ;;  %v340_v38 = vadd.f32 %v339_v28, %v266_v16 }
  0x3a   :  { %v359_v14 = vrot.slane %v354_v9, %v358_v7  ;;  %v363_v15 = vrot.slane %v354_v9, %v362_v8 }
  0x3b   :  { %v304_v43 = vadd.f32 %v303_v37, %v267_v25  ;;  %v341_v44 = vadd.f32 %v340_v38, %v268_v26 }
  0x3d   :  { %v305_v49 = vadd.f32 %v304_v43, %v269_v35  ;;  %v342_v50 = vadd.f32 %v341_v44, %v270_v36 }
  0x3f   :  { %v306_v53 = vadd.f32 %v305_v49, %v271_v41  ;;  %v343_v54 = vadd.f32 %v342_v50, %v272_v42 }
  0x41   :  { %v307_v57 = vadd.f32 %v306_v53, %v273_v47  ;;  %v344_v58 = vadd.f32 %v343_v54, %v274_v48 }
  0x43   :  { %v308_v59 = vadd.f32 %v307_v57, %v275_v51  ;;  %v345_v60 = vadd.f32 %v344_v58, %v276_v52 }
  0x45   :  { %v309_v62 = vadd.f32 %v308_v59, %v277_v55  ;;  %v346_v63 = vadd.f32 %v345_v60, %v278_v56 }
  0x47   :  { %v310_v0 = vrot.slane %v309_v62, 4  ;;  %v347_v1 = vrot.slane %v346_v63, 4 }
  0x49   :  { %v311_v3 = vadd.f32 %v310_v0, %v309_v62  ;;  %v348_v4 = vadd.f32 %v347_v1, %v346_v63 }
  0x4b   :  { %v312_v5 = vrot.slane %v311_v3, 2  ;;  %v349_v6 = vrot.slane %v348_v4, 2 }
  0x4d   :  { %v313_v10 = vadd.f32 %v312_v5, %v311_v3  ;;  %v350_v11 = vadd.f32 %v349_v6, %v348_v4 }
  0x4f   :  { %v314_v12 = vrot.slane %v313_v10, 1  ;;  %v351_v13 = vrot.slane %v350_v11, 1 }
  0x51   :  { %v315_v16 = vadd.f32 %v314_v12, %v313_v10  ;;  %v352_v17 = vadd.f32 %v351_v13, %v350_v11 }
  0x53   :  { %v366_v18 = vmul.f32 %v359_v14, %v315_v16  ;;  %v367_v19 = vmul.f32 %v363_v15, %v352_v17 }
  0x55   :  { %v369_v20 = vsel %vm368_vm1, %v366_v18, 0.0  ;;  %v370_v21 = vsel %vm368_vm1, %v367_v19, 0.0 }
  0x56   :  { %v371_v22 = vadd.f32 %v370_v21, %v369_v20 }
  0x58   :  { %372 = vadd.xlane.f32.xlu0 %v371_v22 }
  0xe1   :  { %v373_v24 = vpop.xlane.xlu0 %372 }
  0xe2   :  { %v374_v25 = vmul.f32 0.00390625, %v373_v24 }
  0xe4   :  { %v375_v26 = vadd.f32 %v374_v25, %v353_v23 }
  0xe6   :  { %377 = vst.msk [vmem:[#allocation2] sm:$0x1] %vm21_vm0, %v375_v26 }
  0xe7   :  { %405 = shalt.err (!%p402_p4)
}
  0xe8   :  { %387 = dma.vmem_to_hbm [thread:$0]  %s385_s26, 16, %s833_s3, [#allocation3]  }
  0xe9   :  { %414 = dma.done.wait [#allocation3], 16  }
  0xea   :  { %415 = vsyncadd [#allocation3], 4294967280 }
  0xeb   :  { %391 = vsyncpa [#allocation3], 1 }

</bundles_post_ra>
